<compile_context>
chip_gen: v6e
topology: v6e:2x2x1
jax: 0.10.0
libtpu: 0.0.40
codegen_flags: <defaults>
</compile_context>

<pallas_src>
import functools
import math

import jax
import jax.numpy as jnp
from jax.experimental import pallas as pl
from jax.experimental.pallas import tpu as pltpu


# ---------------------------------------------------------------------------
# im2col glue (plain JAX, bf16): patches in (N, C*K*K, Ho*Wo) order so the
# kernel output is lane-dense over HW and already NCHW-flattened.
# ---------------------------------------------------------------------------
def im2col_t(x, k, s, p):
    # x: (N, C, H, W) -> (N, C*k*k, Ho*Wo), plus Ho, Wo
    N, C, H, W = x.shape
    xp = jnp.pad(x, ((0, 0), (0, 0), (p, p), (p, p)))
    Ho = (H + 2 * p - k) // s + 1
    Wo = (W + 2 * p - k) // s + 1
    patches = []
    for i in range(k):
        for j in range(k):
            patches.append(xp[:, :, i:i + s * Ho:s, j:j + s * Wo:s])  # (N,C,Ho,Wo)
    pt = jnp.stack(patches, axis=2)                # (N, C, k*k, Ho, Wo)
    return pt.reshape(N, C * k * k, Ho * Wo), Ho, Wo


def _round_up(v, m):
    return (v + m - 1) // m * m


def _pack_lanes(patches, B):
    # (N, CKK, HW) -> (N//B, CKK, B*HW); consecutive samples share a lane block.
    N, CKK, HW = patches.shape
    return (patches.reshape(N // B, B, CKK, HW)
            .transpose(0, 2, 1, 3)
            .reshape(N // B, CKK, B * HW))


def _pack_factor(N, HW):
    # Pack enough samples along lanes to reach (at least approach) 128 lanes.
    return math.gcd(N, max(1, 128 // HW))


# ---------------------------------------------------------------------------
# Pallas kernels.  Per grid step:
#   p_ref : (1, CKKp, L) bf16      w_ref : (Cout, CKKp) bf16
#   b/g/bt: (Cout, 1)    f32       avg   : (L, L) f32 (block-diag 1/HW)
#   o_ref : (1, Cout, L) bf16  (lane-dense over L = B*HW or an HW tile)
# ---------------------------------------------------------------------------
def _conv_lrelu_kernel(p_ref, w_ref, b_ref, o_ref):
    # Conv + bias + LeakyReLU(0.2)        (layer 1: no InstanceNorm)
    y = jnp.dot(w_ref[...], p_ref[0], preferred_element_type=jnp.float32)
    y = y + b_ref[...]
    o_ref[0] = jnp.maximum(y, 0.2 * y).astype(o_ref.dtype)


def _conv_in_lrelu_kernel(p_ref, w_ref, g_ref, bt_ref, avg_ref, o_ref):
    # Conv + InstanceNorm(affine, eps=1e-5, biased var) + LeakyReLU(0.2).
    # Conv bias is omitted: a per-channel constant is exactly cancelled by IN.
    # Per-sample mean/var over the packed lane axis via a block-diagonal
    # averaging matmul (keeps the tile lane-dense, runs on the MXU).
    y = jnp.dot(w_ref[...], p_ref[0], preferred_element_type=jnp.float32)
    mean = jnp.dot(y, avg_ref[...], preferred_element_type=jnp.float32)
    cent = y - mean
    var = jnp.dot(cent * cent, avg_ref[...], preferred_element_type=jnp.float32)
    y = cent * (g_ref[...] * jax.lax.rsqrt(var + 1e-5)) + bt_ref[...]
    o_ref[0] = jnp.maximum(y, 0.2 * y).astype(o_ref.dtype)


def _conv_in_lrelu_final_kernel(p_ref, w_ref, g_ref, bt_ref, avg_ref,
                                w5_ref, seg_ref, b5_ref, o_ref):
    # Layer-4 block fused with the final Conv2d(dim*8, 1, 4) (valid, stride 1).
    # w5_ref : (Cout, B*16) f32  (final weight.view(1, Cout*16), tiled over B)
    # seg_ref: (B*16, B)    f32  per-sample segment-sum indicator
    # b5_ref : (1, 1)       f32   o_ref: (1, 1, B) f32
    y = jnp.dot(w_ref[...], p_ref[0], preferred_element_type=jnp.float32)
    mean = jnp.dot(y, avg_ref[...], preferred_element_type=jnp.float32)
    cent = y - mean
    var = jnp.dot(cent * cent, avg_ref[...], preferred_element_type=jnp.float32)
    y = cent * (g_ref[...] * jax.lax.rsqrt(var + 1e-5)) + bt_ref[...]
    y = jnp.maximum(y, 0.2 * y)                              # (Cout, B*16)
    z = y * w5_ref[...]
    s = jnp.sum(z, axis=0, keepdims=True)                    # (1, B*16)
    out = jnp.dot(s, seg_ref[...], preferred_element_type=jnp.float32)  # (1, B)
    o_ref[0] = out + b5_ref[...]


# ---------------------------------------------------------------------------
# Wrappers around pallas_call
# ---------------------------------------------------------------------------
def conv_lrelu(x, w2d, b, k, s, p, hw_tile=256):
    # Layer 1: conv + bias + LeakyReLU, HW tiled across a second grid axis so
    # each TensorCore gets several pipelined steps.
    N = x.shape[0]
    Cout, CKKp = w2d.shape
    patches, Ho, Wo = im2col_t(x, k, s, p)                   # bf16
    CKK = patches.shape[1]
    if CKK != CKKp:
        patches = jnp.pad(patches, ((0, 0), (0, CKKp - CKK), (0, 0)))
    HW = Ho * Wo
    thw = hw_tile if (HW % hw_tile == 0 and HW > hw_tile) else HW

    out = pl.pallas_call(
        _conv_lrelu_kernel,
        out_shape=jax.ShapeDtypeStruct((N, Cout, HW), jnp.bfloat16),
        grid=(N, HW // thw),
        in_specs=[
            pl.BlockSpec((1, CKKp, thw), lambda n, t: (n, 0, t)),
            pl.BlockSpec((Cout, CKKp), lambda n, t: (0, 0)),
            pl.BlockSpec((Cout, 1), lambda n, t: (0, 0)),
        ],
        out_specs=pl.BlockSpec((1, Cout, thw), lambda n, t: (n, 0, t)),
        compiler_params=pltpu.CompilerParams(
            dimension_semantics=("parallel", "parallel")),
    )(patches, w2d, b)
    return out.reshape(N, Cout, Ho, Wo)


def conv_in_lrelu(x, w2d, gamma, beta, k, s, p):
    # Conv + InstanceNorm(affine) + LeakyReLU, with B samples packed on lanes
    # (B*HW aims for >= 128 lanes so stores are unmasked and MXU N-util rises).
    N = x.shape[0]
    Cout, CKKp = w2d.shape
    patches, Ho, Wo = im2col_t(x, k, s, p)                   # bf16
    CKK = patches.shape[1]
    if CKK != CKKp:
        patches = jnp.pad(patches, ((0, 0), (0, CKKp - CKK), (0, 0)))
    HW = Ho * Wo
    B = _pack_factor(N, HW)
    patches = _pack_lanes(patches, B)
    BHW = B * HW
    NG = N // B
    avg = jnp.kron(jnp.eye(B, dtype=jnp.float32),
                   jnp.full((HW, HW), 1.0 / HW, jnp.float32))

    out = pl.pallas_call(
        _conv_in_lrelu_kernel,
        out_shape=jax.ShapeDtypeStruct((NG, Cout, BHW), jnp.bfloat16),
        grid=(NG,),
        in_specs=[
            pl.BlockSpec((1, CKKp, BHW), lambda n: (n, 0, 0)),
            pl.BlockSpec((Cout, CKKp), lambda n: (0, 0)),
            pl.BlockSpec((Cout, 1), lambda n: (0, 0)),
            pl.BlockSpec((Cout, 1), lambda n: (0, 0)),
            pl.BlockSpec((BHW, BHW), lambda n: (0, 0)),
        ],
        out_specs=pl.BlockSpec((1, Cout, BHW), lambda n: (n, 0, 0)),
        compiler_params=pltpu.CompilerParams(
            dimension_semantics=("parallel",)),
    )(patches, w2d, gamma, beta, avg)
    # Unpack lanes back to NCHW (bf16, cheap; fuses into the next im2col).
    return (out.reshape(NG, Cout, B, HW)
            .transpose(0, 2, 1, 3)
            .reshape(N, Cout, Ho, Wo))


def conv_in_lrelu_final(x, w2d, gamma, beta, w5, b5, k, s, p):
    # Layer 4 (conv + IN + LReLU) fused with the final 1-channel 4x4 valid conv.
    N = x.shape[0]
    Cout, CKKp = w2d.shape
    patches, Ho, Wo = im2col_t(x, k, s, p)                   # bf16
    assert Ho == 4 and Wo == 4, (
        "fused final conv assumes a 4x4 feature map (i.e. 64x64 input)")
    CKK = patches.shape[1]
    if CKK != CKKp:
        patches = jnp.pad(patches, ((0, 0), (0, CKKp - CKK), (0, 0)))
    HW = Ho * Wo                                             # 16
    B = _pack_factor(N, HW)
    patches = _pack_lanes(patches, B)
    BHW = B * HW
    NG = N // B
    avg = jnp.kron(jnp.eye(B, dtype=jnp.float32),
                   jnp.full((HW, HW), 1.0 / HW, jnp.float32))
    seg = jnp.kron(jnp.eye(B, dtype=jnp.float32),
                   jnp.ones((HW, 1), jnp.float32))
    w5t = jnp.tile(w5, (1, B))                               # (Cout, B*HW) f32

    out = pl.pallas_call(
        _conv_in_lrelu_final_kernel,
        out_shape=jax.ShapeDtypeStruct((NG, 1, B), jnp.float32),
        grid=(NG,),
        in_specs=[
            pl.BlockSpec((1, CKKp, BHW), lambda n: (n, 0, 0)),
            pl.BlockSpec((Cout, CKKp), lambda n: (0, 0)),
            pl.BlockSpec((Cout, 1), lambda n: (0, 0)),
            pl.BlockSpec((Cout, 1), lambda n: (0, 0)),
            pl.BlockSpec((BHW, BHW), lambda n: (0, 0)),
            pl.BlockSpec((Cout, BHW), lambda n: (0, 0)),
            pl.BlockSpec((BHW, B), lambda n: (0, 0)),
            pl.BlockSpec((1, 1), lambda n: (0, 0)),
        ],
        out_specs=pl.BlockSpec((1, 1, B), lambda n: (n, 0, 0)),
        compiler_params=pltpu.CompilerParams(
            dimension_semantics=("parallel",)),
    )(patches, w2d, gamma, beta, avg, w5t, seg, b5)
    return out.reshape(N)                                    # == torch's y.view(-1)


# ---------------------------------------------------------------------------
# Full forward pass of DGWGAN
#   Conv(5,2,2)+LReLU -> 3x [Conv(5,2,2)+InstanceNorm(affine)+LReLU]
#   -> Conv(4, valid) -> view(-1)
# ---------------------------------------------------------------------------
def dgwgan_forward(x, params):
    l1, l2, l3, l4 = (params["layer1"], params["layer2"],
                      params["layer3"], params["layer4"])
    h = x.astype(jnp.bfloat16)                               # bf16 activation path
    h = conv_lrelu(h, l1["w"], l1["b"], k=5, s=2, p=2)
    h = conv_in_lrelu(h, l2["w"], l2["gamma"], l2["beta"], k=5, s=2, p=2)
    h = conv_in_lrelu(h, l3["w"], l3["gamma"], l3["beta"], k=5, s=2, p=2)
    y = conv_in_lrelu_final(h, l4["w"], l4["gamma"], l4["beta"],
                            params["w5"], params["b5"], k=5, s=2, p=2)
    return y


# ---------------------------------------------------------------------------
# Deterministic parameter construction (synthetic init, pre-shaped for kernels)
# ---------------------------------------------------------------------------
def make_params(key, in_dim=3, dim=8, ckk_align=8):
    def conv_params(k, cin, cout, ksz, with_in):
        ks = jax.random.split(k, 4)
        ckk = cin * ksz * ksz
        ckkp = _round_up(ckk, ckk_align)
        w = 0.05 * jax.random.normal(ks[0], (cout, cin, ksz, ksz), jnp.float32)
        # pre-shaped to torch's weight.view(Cout, Cin*k*k), zero-padded to a
        # sublane-aligned contraction dim, stored bf16 (MXU-native).
        w2d = jnp.pad(w.reshape(cout, ckk), ((0, 0), (0, ckkp - ckk)))
        b = 0.05 * jax.random.normal(ks[1], (cout,), jnp.float32)
        p = {"w": w2d.astype(jnp.bfloat16), "b": b.reshape(cout, 1)}
        if with_in:
            # NOTE: for the IN blocks the conv bias above is kept only for
            # parameter parity with torch; InstanceNorm exactly cancels a
            # per-channel constant, so the kernels never read it.
            g = 1.0 + 0.1 * jax.random.normal(ks[2], (cout,), jnp.float32)
            bt = 0.1 * jax.random.normal(ks[3], (cout,), jnp.float32)
            p["gamma"] = g.reshape(cout, 1)
            p["beta"] = bt.reshape(cout, 1)
        return p

    keys = jax.random.split(key, 6)
    params = {
        "layer1": conv_params(keys[0], in_dim, dim, 5, with_in=False),
        "layer2": conv_params(keys[1], dim, dim * 2, 5, with_in=True),
        "layer3": conv_params(keys[2], dim * 2, dim * 4, 5, with_in=True),
        "layer4": conv_params(keys[3], dim * 4, dim * 8, 5, with_in=True),
    }
    # final Conv2d(dim*8, 1, 4): weight.view(1, dim*8*4*4) -> (dim*8, 16) f32
    w5 = 0.05 * jax.random.normal(keys[4], (1, dim * 8, 4, 4), jnp.float32)
    params["w5"] = w5.reshape(dim * 8, 16)
    params["b5"] = 0.05 * jax.random.normal(keys[5], (1,), jnp.float32).reshape(1, 1)
    return params


if __name__ == "__main__":
    key = jax.random.PRNGKey(0)
    kp, kx = jax.random.split(key)

    # Small config: dim=8; input 64x64 so the spatial size before the final
    # 4x4 valid conv is exactly 4x4, matching the module's structure.
    params = make_params(kp, in_dim=3, dim=8)
    x = jax.random.normal(kx, (2, 3, 64, 64), jnp.float32)

    fwd = jax.jit(functools.partial(dgwgan_forward, params=params))
    y = fwd(x)
    jax.block_until_ready(y)

    assert y.shape == (2,)
    assert bool(jnp.all(jnp.isfinite(y)))
    print("KERNEL_OK")
</pallas_src>

<mosaic_0001>
module attributes {stable_mosaic.version = 11 : i64} {
  func.func @_conv_lrelu_kernel(%arg0: i32, %arg1: i32, %arg2: memref<1x80x256xbf16, #tpu.memory_space<vmem>>, %arg3: memref<8x80xbf16, #tpu.memory_space<vmem>>, %arg4: memref<8x1xf32, #tpu.memory_space<vmem>>, %arg5: memref<1x8x256xbf16, #tpu.memory_space<vmem>>) attributes {dimension_semantics = [#tpu.dimension_semantics<parallel>, #tpu.dimension_semantics<parallel>], iteration_bounds = array<i64: 2, 4>, scalar_prefetch = 0 : i64, scratch_operands = 0 : i64, tpu.core_type = #tpu.core_type<tc>, window_params = [{transform_indices = @transform_0, window_bounds = array<i64: 1, 80, 256>}, {pipeline_mode = #tpu.pipeline_mode<synchronous>, transform_indices = @transform_1, window_bounds = array<i64: 8, 80>}, {pipeline_mode = #tpu.pipeline_mode<synchronous>, transform_indices = @transform_2, window_bounds = array<i64: 8, 1>}, {transform_indices = @transform_3, window_bounds = array<i64: 1, 8, 256>}]} {
    %c0 = arith.constant 0 : index
    %c0_0 = arith.constant 0 : index
    %0 = vector.load %arg3[%c0, %c0_0] : memref<8x80xbf16, #tpu.memory_space<vmem>>, vector<8x80xbf16>
    %c0_1 = arith.constant 0 : index
    %c0_2 = arith.constant 0 : index
    %c0_3 = arith.constant 0 : index
    %1 = vector.load %arg2[%c0_1, %c0_2, %c0_3] : memref<1x80x256xbf16, #tpu.memory_space<vmem>>, vector<1x80x256xbf16>
    %2 = vector.shape_cast %1 : vector<1x80x256xbf16> to vector<80x256xbf16>
    %cst = arith.constant dense<0.000000e+00> : vector<8x256xf32>
    %3 = tpu.matmul %0, %2, %cst {dimension_numbers = #tpu.dot_dimension_numbers<[1], [0], [0], [1], [0, 0, 1, 1], [], []>} : vector<8x80xbf16>, vector<80x256xbf16>, vector<8x256xf32> -> vector<8x256xf32>
    %c0_4 = arith.constant 0 : index
    %c0_5 = arith.constant 0 : index
    %4 = vector.load %arg4[%c0_4, %c0_5] : memref<8x1xf32, #tpu.memory_space<vmem>>, vector<8x1xf32>
    %5 = vector.broadcast %4 : vector<8x1xf32> to vector<8x256xf32>
    %6 = arith.addf %3, %5 : vector<8x256xf32>
    %cst_6 = arith.constant 2.000000e-01 : f32
    %7 = vector.broadcast %cst_6 : f32 to vector<8x256xf32>
    %8 = arith.mulf %7, %6 : vector<8x256xf32>
    %9 = arith.maximumf %6, %8 : vector<8x256xf32>
    %10 = arith.truncf %9 : vector<8x256xf32> to vector<8x256xbf16>
    %c0_7 = arith.constant 0 : index
    %c0_8 = arith.constant 0 : index
    %c0_9 = arith.constant 0 : index
    %11 = vector.load %arg5[%c0_7, %c0_8, %c0_9] : memref<1x8x256xbf16, #tpu.memory_space<vmem>>, vector<1x8x256xbf16>
    %12 = vector.shape_cast %11 : vector<1x8x256xbf16> to vector<8x256xbf16>
    %13 = vector.shape_cast %10 : vector<8x256xbf16> to vector<1x8x256xbf16>
    tpu.vector_store %arg5[%c0_7, %c0_8, %c0_9], %13 {strides = array<i32>} : memref<1x8x256xbf16, #tpu.memory_space<vmem>>, vector<1x8x256xbf16>,
    return
  }
  func.func @transform_0(%arg0: i32, %arg1: i32) -> (i32, i32, i32) {
    %c0_i32 = arith.constant 0 : i32
    %c0_i32_0 = arith.constant 0 : i32
    return %arg0, %c0_i32, %arg1 : i32, i32, i32
  }
  func.func @transform_1(%arg0: i32, %arg1: i32) -> (i32, i32) {
    %c0_i32 = arith.constant 0 : i32
    %c0_i32_0 = arith.constant 0 : i32
    %c0_i32_1 = arith.constant 0 : i32
    return %c0_i32, %c0_i32_0 : i32, i32
  }
  func.func @transform_2(%arg0: i32, %arg1: i32) -> (i32, i32) {
    %c0_i32 = arith.constant 0 : i32
    %c0_i32_0 = arith.constant 0 : i32
    %c0_i32_1 = arith.constant 0 : i32
    return %c0_i32, %c0_i32_0 : i32, i32
  }
  func.func @transform_3(%arg0: i32, %arg1: i32) -> (i32, i32, i32) {
    %c0_i32 = arith.constant 0 : i32
    %c0_i32_0 = arith.constant 0 : i32
    return %arg0, %c0_i32, %arg1 : i32, i32, i32
  }
}

module attributes {stable_mosaic.version = 11 : i64} {
  func.func @_conv_in_lrelu_kernel(%arg0: i32, %arg1: memref<1x200x256xbf16, #tpu.memory_space<vmem>>, %arg2: memref<16x200xbf16, #tpu.memory_space<vmem>>, %arg3: memref<16x1xf32, #tpu.memory_space<vmem>>, %arg4: memref<16x1xf32, #tpu.memory_space<vmem>>, %arg5: memref<256x256xf32, #tpu.memory_space<vmem>>, %arg6: memref<1x16x256xbf16, #tpu.memory_space<vmem>>) attributes {dimension_semantics = [#tpu.dimension_semantics<parallel>], iteration_bounds = array<i64: 2>, scalar_prefetch = 0 : i64, scratch_operands = 0 : i64, tpu.core_type = #tpu.core_type<tc>, window_params = [{transform_indices = @transform_0, window_bounds = array<i64: 1, 200, 256>}, {pipeline_mode = #tpu.pipeline_mode<synchronous>, transform_indices = @transform_1, window_bounds = array<i64: 16, 200>}, {pipeline_mode = #tpu.pipeline_mode<synchronous>, transform_indices = @transform_2, window_bounds = array<i64: 16, 1>}, {pipeline_mode = #tpu.pipeline_mode<synchronous>, transform_indices = @transform_3, window_bounds = array<i64: 16, 1>}, {pipeline_mode = #tpu.pipeline_mode<synchronous>, transform_indices = @transform_4, window_bounds = array<i64: 256, 256>}, {transform_indices = @transform_5, window_bounds = array<i64: 1, 16, 256>}]} {
    %c0 = arith.constant 0 : index
    %c0_0 = arith.constant 0 : index
    %0 = vector.load %arg2[%c0, %c0_0] : memref<16x200xbf16, #tpu.memory_space<vmem>>, vector<16x200xbf16>
    %c0_1 = arith.constant 0 : index
    %c0_2 = arith.constant 0 : index
    %c0_3 = arith.constant 0 : index
    %1 = vector.load %arg1[%c0_1, %c0_2, %c0_3] : memref<1x200x256xbf16, #tpu.memory_space<vmem>>, vector<1x200x256xbf16>
    %2 = vector.shape_cast %1 : vector<1x200x256xbf16> to vector<200x256xbf16>
    %cst = arith.constant dense<0.000000e+00> : vector<16x256xf32>
    %3 = tpu.matmul %0, %2, %cst {dimension_numbers = #tpu.dot_dimension_numbers<[1], [0], [0], [1], [0, 0, 1, 1], [], []>} : vector<16x200xbf16>, vector<200x256xbf16>, vector<16x256xf32> -> vector<16x256xf32>
    %c0_4 = arith.constant 0 : index
    %c0_5 = arith.constant 0 : index
    %4 = vector.load %arg5[%c0_4, %c0_5] : memref<256x256xf32, #tpu.memory_space<vmem>>, vector<256x256xf32>
    %cst_6 = arith.constant dense<0.000000e+00> : vector<16x256xf32>
    %5 = tpu.matmul %3, %4, %cst_6 {dimension_numbers = #tpu.dot_dimension_numbers<[1], [0], [0], [1], [0, 0, 1, 1], [], []>} : vector<16x256xf32>, vector<256x256xf32>, vector<16x256xf32> -> vector<16x256xf32>
    %6 = arith.subf %3, %5 : vector<16x256xf32>
    %7 = arith.mulf %6, %6 : vector<16x256xf32>
    %c0_7 = arith.constant 0 : index
    %c0_8 = arith.constant 0 : index
    %8 = vector.load %arg5[%c0_7, %c0_8] : memref<256x256xf32, #tpu.memory_space<vmem>>, vector<256x256xf32>
    %cst_9 = arith.constant dense<0.000000e+00> : vector<16x256xf32>
    %9 = tpu.matmul %7, %8, %cst_9 {dimension_numbers = #tpu.dot_dimension_numbers<[1], [0], [0], [1], [0, 0, 1, 1], [], []>} : vector<16x256xf32>, vector<256x256xf32>, vector<16x256xf32> -> vector<16x256xf32>
    %c0_10 = arith.constant 0 : index
    %c0_11 = arith.constant 0 : index
    %10 = vector.load %arg3[%c0_10, %c0_11] : memref<16x1xf32, #tpu.memory_space<vmem>>, vector<16x1xf32>
    %cst_12 = arith.constant 9.99999974E-6 : f32
    %11 = vector.broadcast %cst_12 : f32 to vector<16x256xf32>
    %12 = arith.addf %9, %11 : vector<16x256xf32>
    %13 = math.rsqrt %12 : vector<16x256xf32>
    %14 = vector.broadcast %10 : vector<16x1xf32> to vector<16x256xf32>
    %15 = arith.mulf %14, %13 : vector<16x256xf32>
    %16 = arith.mulf %6, %15 : vector<16x256xf32>
    %c0_13 = arith.constant 0 : index
    %c0_14 = arith.constant 0 : index
    %17 = vector.load %arg4[%c0_13, %c0_14] : memref<16x1xf32, #tpu.memory_space<vmem>>, vector<16x1xf32>
    %18 = vector.broadcast %17 : vector<16x1xf32> to vector<16x256xf32>
    %19 = arith.addf %16, %18 : vector<16x256xf32>
    %cst_15 = arith.constant 2.000000e-01 : f32
    %20 = vector.broadcast %cst_15 : f32 to vector<16x256xf32>
    %21 = arith.mulf %20, %19 : vector<16x256xf32>
    %22 = arith.maximumf %19, %21 : vector<16x256xf32>
    %23 = arith.truncf %22 : vector<16x256xf32> to vector<16x256xbf16>
    %c0_16 = arith.constant 0 : index
    %c0_17 = arith.constant 0 : index
    %c0_18 = arith.constant 0 : index
    %24 = vector.load %arg6[%c0_16, %c0_17, %c0_18] : memref<1x16x256xbf16, #tpu.memory_space<vmem>>, vector<1x16x256xbf16>
    %25 = vector.shape_cast %24 : vector<1x16x256xbf16> to vector<16x256xbf16>
    %26 = vector.shape_cast %23 : vector<16x256xbf16> to vector<1x16x256xbf16>
    tpu.vector_store %arg6[%c0_16, %c0_17, %c0_18], %26 {strides = array<i32>} : memref<1x16x256xbf16, #tpu.memory_space<vmem>>, vector<1x16x256xbf16>,
    return
  }
  func.func @transform_0(%arg0: i32) -> (i32, i32, i32) {
    %c0_i32 = arith.constant 0 : i32
    %c0_i32_0 = arith.constant 0 : i32
    %c0_i32_1 = arith.constant 0 : i32
    return %arg0, %c0_i32, %c0_i32_0 : i32, i32, i32
  }
  func.func @transform_1(%arg0: i32) -> (i32, i32) {
    %c0_i32 = arith.constant 0 : i32
    %c0_i32_0 = arith.constant 0 : i32
    %c0_i32_1 = arith.constant 0 : i32
    return %c0_i32, %c0_i32_0 : i32, i32
  }
  func.func @transform_2(%arg0: i32) -> (i32, i32) {
    %c0_i32 = arith.constant 0 : i32
    %c0_i32_0 = arith.constant 0 : i32
    %c0_i32_1 = arith.constant 0 : i32
    return %c0_i32, %c0_i32_0 : i32, i32
  }
  func.func @transform_3(%arg0: i32) -> (i32, i32) {
    %c0_i32 = arith.constant 0 : i32
    %c0_i32_0 = arith.constant 0 : i32
    %c0_i32_1 = arith.constant 0 : i32
    return %c0_i32, %c0_i32_0 : i32, i32
  }
  func.func @transform_4(%arg0: i32) -> (i32, i32) {
    %c0_i32 = arith.constant 0 : i32
    %c0_i32_0 = arith.constant 0 : i32
    %c0_i32_1 = arith.constant 0 : i32
    return %c0_i32, %c0_i32_0 : i32, i32
  }
  func.func @transform_5(%arg0: i32) -> (i32, i32, i32) {
    %c0_i32 = arith.constant 0 : i32
    %c0_i32_0 = arith.constant 0 : i32
    %c0_i32_1 = arith.constant 0 : i32
    return %arg0, %c0_i32, %c0_i32_0 : i32, i32, i32
  }
}

module attributes {stable_mosaic.version = 11 : i64} {
  func.func @_conv_in_lrelu_kernel(%arg0: i32, %arg1: memref<1x400x128xbf16, #tpu.memory_space<vmem>>, %arg2: memref<32x400xbf16, #tpu.memory_space<vmem>>, %arg3: memref<32x1xf32, #tpu.memory_space<vmem>>, %arg4: memref<32x1xf32, #tpu.memory_space<vmem>>, %arg5: memref<128x128xf32, #tpu.memory_space<vmem>>, %arg6: memref<1x32x128xbf16, #tpu.memory_space<vmem>>) attributes {dimension_semantics = [#tpu.dimension_semantics<parallel>], iteration_bounds = array<i64: 1>, scalar_prefetch = 0 : i64, scratch_operands = 0 : i64, tpu.core_type = #tpu.core_type<tc>, window_params = [{transform_indices = @transform_0, window_bounds = array<i64: 1, 400, 128>}, {pipeline_mode = #tpu.pipeline_mode<synchronous>, transform_indices = @transform_1, window_bounds = array<i64: 32, 400>}, {pipeline_mode = #tpu.pipeline_mode<synchronous>, transform_indices = @transform_2, window_bounds = array<i64: 32, 1>}, {pipeline_mode = #tpu.pipeline_mode<synchronous>, transform_indices = @transform_3, window_bounds = array<i64: 32, 1>}, {pipeline_mode = #tpu.pipeline_mode<synchronous>, transform_indices = @transform_4, window_bounds = array<i64: 128, 128>}, {transform_indices = @transform_5, window_bounds = array<i64: 1, 32, 128>}]} {
    %c0 = arith.constant 0 : index
    %c0_0 = arith.constant 0 : index
    %0 = vector.load %arg2[%c0, %c0_0] : memref<32x400xbf16, #tpu.memory_space<vmem>>, vector<32x400xbf16>
    %c0_1 = arith.constant 0 : index
    %c0_2 = arith.constant 0 : index
    %c0_3 = arith.constant 0 : index
    %1 = vector.load %arg1[%c0_1, %c0_2, %c0_3] : memref<1x400x128xbf16, #tpu.memory_space<vmem>>, vector<1x400x128xbf16>
    %2 = vector.shape_cast %1 : vector<1x400x128xbf16> to vector<400x128xbf16>
    %cst = arith.constant dense<0.000000e+00> : vector<32x128xf32>
    %3 = tpu.matmul %0, %2, %cst {dimension_numbers = #tpu.dot_dimension_numbers<[1], [0], [0], [1], [0, 0, 1, 1], [], []>} : vector<32x400xbf16>, vector<400x128xbf16>, vector<32x128xf32> -> vector<32x128xf32>
    %c0_4 = arith.constant 0 : index
    %c0_5 = arith.constant 0 : index
    %4 = vector.load %arg5[%c0_4, %c0_5] : memref<128x128xf32, #tpu.memory_space<vmem>>, vector<128x128xf32>
    %cst_6 = arith.constant dense<0.000000e+00> : vector<32x128xf32>
    %5 = tpu.matmul %3, %4, %cst_6 {dimension_numbers = #tpu.dot_dimension_numbers<[1], [0], [0], [1], [0, 0, 1, 1], [], []>} : vector<32x128xf32>, vector<128x128xf32>, vector<32x128xf32> -> vector<32x128xf32>
    %6 = arith.subf %3, %5 : vector<32x128xf32>
    %7 = arith.mulf %6, %6 : vector<32x128xf32>
    %c0_7 = arith.constant 0 : index
    %c0_8 = arith.constant 0 : index
    %8 = vector.load %arg5[%c0_7, %c0_8] : memref<128x128xf32, #tpu.memory_space<vmem>>, vector<128x128xf32>
    %cst_9 = arith.constant dense<0.000000e+00> : vector<32x128xf32>
    %9 = tpu.matmul %7, %8, %cst_9 {dimension_numbers = #tpu.dot_dimension_numbers<[1], [0], [0], [1], [0, 0, 1, 1], [], []>} : vector<32x128xf32>, vector<128x128xf32>, vector<32x128xf32> -> vector<32x128xf32>
    %c0_10 = arith.constant 0 : index
    %c0_11 = arith.constant 0 : index
    %10 = vector.load %arg3[%c0_10, %c0_11] : memref<32x1xf32, #tpu.memory_space<vmem>>, vector<32x1xf32>
    %cst_12 = arith.constant 9.99999974E-6 : f32
    %11 = vector.broadcast %cst_12 : f32 to vector<32x128xf32>
    %12 = arith.addf %9, %11 : vector<32x128xf32>
    %13 = math.rsqrt %12 : vector<32x128xf32>
    %14 = vector.broadcast %10 : vector<32x1xf32> to vector<32x128xf32>
    %15 = arith.mulf %14, %13 : vector<32x128xf32>
    %16 = arith.mulf %6, %15 : vector<32x128xf32>
    %c0_13 = arith.constant 0 : index
    %c0_14 = arith.constant 0 : index
    %17 = vector.load %arg4[%c0_13, %c0_14] : memref<32x1xf32, #tpu.memory_space<vmem>>, vector<32x1xf32>
    %18 = vector.broadcast %17 : vector<32x1xf32> to vector<32x128xf32>
    %19 = arith.addf %16, %18 : vector<32x128xf32>
    %cst_15 = arith.constant 2.000000e-01 : f32
    %20 = vector.broadcast %cst_15 : f32 to vector<32x128xf32>
    %21 = arith.mulf %20, %19 : vector<32x128xf32>
    %22 = arith.maximumf %19, %21 : vector<32x128xf32>
    %23 = arith.truncf %22 : vector<32x128xf32> to vector<32x128xbf16>
    %c0_16 = arith.constant 0 : index
    %c0_17 = arith.constant 0 : index
    %c0_18 = arith.constant 0 : index
    %24 = vector.load %arg6[%c0_16, %c0_17, %c0_18] : memref<1x32x128xbf16, #tpu.memory_space<vmem>>, vector<1x32x128xbf16>
    %25 = vector.shape_cast %24 : vector<1x32x128xbf16> to vector<32x128xbf16>
    %26 = vector.shape_cast %23 : vector<32x128xbf16> to vector<1x32x128xbf16>
    tpu.vector_store %arg6[%c0_16, %c0_17, %c0_18], %26 {strides = array<i32>} : memref<1x32x128xbf16, #tpu.memory_space<vmem>>, vector<1x32x128xbf16>,
    return
  }
  func.func @transform_0(%arg0: i32) -> (i32, i32, i32) {
    %c0_i32 = arith.constant 0 : i32
    %c0_i32_0 = arith.constant 0 : i32
    %c0_i32_1 = arith.constant 0 : i32
    return %arg0, %c0_i32, %c0_i32_0 : i32, i32, i32
  }
  func.func @transform_1(%arg0: i32) -> (i32, i32) {
    %c0_i32 = arith.constant 0 : i32
    %c0_i32_0 = arith.constant 0 : i32
    %c0_i32_1 = arith.constant 0 : i32
    return %c0_i32, %c0_i32_0 : i32, i32
  }
  func.func @transform_2(%arg0: i32) -> (i32, i32) {
    %c0_i32 = arith.constant 0 : i32
    %c0_i32_0 = arith.constant 0 : i32
    %c0_i32_1 = arith.constant 0 : i32
    return %c0_i32, %c0_i32_0 : i32, i32
  }
  func.func @transform_3(%arg0: i32) -> (i32, i32) {
    %c0_i32 = arith.constant 0 : i32
    %c0_i32_0 = arith.constant 0 : i32
    %c0_i32_1 = arith.constant 0 : i32
    return %c0_i32, %c0_i32_0 : i32, i32
  }
  func.func @transform_4(%arg0: i32) -> (i32, i32) {
    %c0_i32 = arith.constant 0 : i32
    %c0_i32_0 = arith.constant 0 : i32
    %c0_i32_1 = arith.constant 0 : i32
    return %c0_i32, %c0_i32_0 : i32, i32
  }
  func.func @transform_5(%arg0: i32) -> (i32, i32, i32) {
    %c0_i32 = arith.constant 0 : i32
    %c0_i32_0 = arith.constant 0 : i32
    %c0_i32_1 = arith.constant 0 : i32
    return %arg0, %c0_i32, %c0_i32_0 : i32, i32, i32
  }
}

module attributes {stable_mosaic.version = 11 : i64} {
  func.func @_conv_in_lrelu_final_kernel(%arg0: i32, %arg1: memref<1x800x32xbf16, #tpu.memory_space<vmem>>, %arg2: memref<64x800xbf16, #tpu.memory_space<vmem>>, %arg3: memref<64x1xf32, #tpu.memory_space<vmem>>, %arg4: memref<64x1xf32, #tpu.memory_space<vmem>>, %arg5: memref<32x32xf32, #tpu.memory_space<vmem>>, %arg6: memref<64x32xf32, #tpu.memory_space<vmem>>, %arg7: memref<32x2xf32, #tpu.memory_space<vmem>>, %arg8: memref<1x1xf32, #tpu.memory_space<vmem>>, %arg9: memref<1x1x2xf32, #tpu.memory_space<vmem>>) attributes {dimension_semantics = [#tpu.dimension_semantics<parallel>], iteration_bounds = array<i64: 1>, scalar_prefetch = 0 : i64, scratch_operands = 0 : i64, tpu.core_type = #tpu.core_type<tc>, window_params = [{transform_indices = @transform_0, window_bounds = array<i64: 1, 800, 32>}, {pipeline_mode = #tpu.pipeline_mode<synchronous>, transform_indices = @transform_1, window_bounds = array<i64: 64, 800>}, {pipeline_mode = #tpu.pipeline_mode<synchronous>, transform_indices = @transform_2, window_bounds = array<i64: 64, 1>}, {pipeline_mode = #tpu.pipeline_mode<synchronous>, transform_indices = @transform_3, window_bounds = array<i64: 64, 1>}, {pipeline_mode = #tpu.pipeline_mode<synchronous>, transform_indices = @transform_4, window_bounds = array<i64: 32, 32>}, {pipeline_mode = #tpu.pipeline_mode<synchronous>, transform_indices = @transform_5, window_bounds = array<i64: 64, 32>}, {pipeline_mode = #tpu.pipeline_mode<synchronous>, transform_indices = @transform_6, window_bounds = array<i64: 32, 2>}, {pipeline_mode = #tpu.pipeline_mode<synchronous>, transform_indices = @transform_7, window_bounds = array<i64: 1, 1>}, {transform_indices = @transform_8, window_bounds = array<i64: 1, 1, 2>}]} {
    %c0 = arith.constant 0 : index
    %c0_0 = arith.constant 0 : index
    %0 = vector.load %arg2[%c0, %c0_0] : memref<64x800xbf16, #tpu.memory_space<vmem>>, vector<64x800xbf16>
    %c0_1 = arith.constant 0 : index
    %c0_2 = arith.constant 0 : index
    %c0_3 = arith.constant 0 : index
    %1 = vector.load %arg1[%c0_1, %c0_2, %c0_3] : memref<1x800x32xbf16, #tpu.memory_space<vmem>>, vector<1x800x32xbf16>
    %2 = vector.shape_cast %1 : vector<1x800x32xbf16> to vector<800x32xbf16>
    %cst = arith.constant dense<0.000000e+00> : vector<64x32xf32>
    %3 = tpu.matmul %0, %2, %cst {dimension_numbers = #tpu.dot_dimension_numbers<[1], [0], [0], [1], [0, 0, 1, 1], [], []>} : vector<64x800xbf16>, vector<800x32xbf16>, vector<64x32xf32> -> vector<64x32xf32>
    %c0_4 = arith.constant 0 : index
    %c0_5 = arith.constant 0 : index
    %4 = vector.load %arg5[%c0_4, %c0_5] : memref<32x32xf32, #tpu.memory_space<vmem>>, vector<32x32xf32>
    %cst_6 = arith.constant dense<0.000000e+00> : vector<64x32xf32>
    %5 = tpu.matmul %3, %4, %cst_6 {dimension_numbers = #tpu.dot_dimension_numbers<[1], [0], [0], [1], [0, 0, 1, 1], [], []>} : vector<64x32xf32>, vector<32x32xf32>, vector<64x32xf32> -> vector<64x32xf32>
    %6 = arith.subf %3, %5 : vector<64x32xf32>
    %7 = arith.mulf %6, %6 : vector<64x32xf32>
    %c0_7 = arith.constant 0 : index
    %c0_8 = arith.constant 0 : index
    %8 = vector.load %arg5[%c0_7, %c0_8] : memref<32x32xf32, #tpu.memory_space<vmem>>, vector<32x32xf32>
    %cst_9 = arith.constant dense<0.000000e+00> : vector<64x32xf32>
    %9 = tpu.matmul %7, %8, %cst_9 {dimension_numbers = #tpu.dot_dimension_numbers<[1], [0], [0], [1], [0, 0, 1, 1], [], []>} : vector<64x32xf32>, vector<32x32xf32>, vector<64x32xf32> -> vector<64x32xf32>
    %c0_10 = arith.constant 0 : index
    %c0_11 = arith.constant 0 : index
    %10 = vector.load %arg3[%c0_10, %c0_11] : memref<64x1xf32, #tpu.memory_space<vmem>>, vector<64x1xf32>
    %cst_12 = arith.constant 9.99999974E-6 : f32
    %11 = vector.broadcast %cst_12 : f32 to vector<64x32xf32>
    %12 = arith.addf %9, %11 : vector<64x32xf32>
    %13 = math.rsqrt %12 : vector<64x32xf32>
    %14 = vector.broadcast %10 : vector<64x1xf32> to vector<64x32xf32>
    %15 = arith.mulf %14, %13 : vector<64x32xf32>
    %16 = arith.mulf %6, %15 : vector<64x32xf32>
    %c0_13 = arith.constant 0 : index
    %c0_14 = arith.constant 0 : index
    %17 = vector.load %arg4[%c0_13, %c0_14] : memref<64x1xf32, #tpu.memory_space<vmem>>, vector<64x1xf32>
    %18 = vector.broadcast %17 : vector<64x1xf32> to vector<64x32xf32>
    %19 = arith.addf %16, %18 : vector<64x32xf32>
    %cst_15 = arith.constant 2.000000e-01 : f32
    %20 = vector.broadcast %cst_15 : f32 to vector<64x32xf32>
    %21 = arith.mulf %20, %19 : vector<64x32xf32>
    %22 = arith.maximumf %19, %21 : vector<64x32xf32>
    %c0_16 = arith.constant 0 : index
    %c0_17 = arith.constant 0 : index
    %23 = vector.load %arg6[%c0_16, %c0_17] : memref<64x32xf32, #tpu.memory_space<vmem>>, vector<64x32xf32>
    %24 = arith.mulf %22, %23 : vector<64x32xf32>
    %cst_18 = arith.constant dense<0.000000e+00> : vector<32xf32>
    %25 = vector.multi_reduction <add>, %24, %cst_18 [0] : vector<64x32xf32> to vector<32xf32>
    %26 = vector.shape_cast %25 : vector<32xf32> to vector<1x32xf32>
    %c0_19 = arith.constant 0 : index
    %c0_20 = arith.constant 0 : index
    %27 = vector.load %arg7[%c0_19, %c0_20] : memref<32x2xf32, #tpu.memory_space<vmem>>, vector<32x2xf32>
    %cst_21 = arith.constant dense<0.000000e+00> : vector<1x2xf32>
    %28 = tpu.matmul %26, %27, %cst_21 {dimension_numbers = #tpu.dot_dimension_numbers<[1], [0], [0], [1], [0, 0, 1, 1], [], []>} : vector<1x32xf32>, vector<32x2xf32>, vector<1x2xf32> -> vector<1x2xf32>
    %c0_22 = arith.constant 0 : index
    %c0_23 = arith.constant 0 : index
    %29 = vector.load %arg8[%c0_22, %c0_23] : memref<1x1xf32, #tpu.memory_space<vmem>>, vector<1x1xf32>
    %30 = vector.broadcast %29 : vector<1x1xf32> to vector<1x2xf32>
    %31 = arith.addf %28, %30 : vector<1x2xf32>
    %c0_24 = arith.constant 0 : index
    %c0_25 = arith.constant 0 : index
    %c0_26 = arith.constant 0 : index
    %32 = vector.load %arg9[%c0_24, %c0_25, %c0_26] : memref<1x1x2xf32, #tpu.memory_space<vmem>>, vector<1x1x2xf32>
    %33 = vector.shape_cast %32 : vector<1x1x2xf32> to vector<1x2xf32>
    %34 = vector.shape_cast %31 : vector<1x2xf32> to vector<1x1x2xf32>
    tpu.vector_store %arg9[%c0_24, %c0_25, %c0_26], %34 {strides = array<i32>} : memref<1x1x2xf32, #tpu.memory_space<vmem>>, vector<1x1x2xf32>,
    return
  }
  func.func @transform_0(%arg0: i32) -> (i32, i32, i32) {
    %c0_i32 = arith.constant 0 : i32
    %c0_i32_0 = arith.constant 0 : i32
    %c0_i32_1 = arith.constant 0 : i32
    return %arg0, %c0_i32, %c0_i32_0 : i32, i32, i32
  }
  func.func @transform_1(%arg0: i32) -> (i32, i32) {
    %c0_i32 = arith.constant 0 : i32
    %c0_i32_0 = arith.constant 0 : i32
    %c0_i32_1 = arith.constant 0 : i32
    return %c0_i32, %c0_i32_0 : i32, i32
  }
  func.func @transform_2(%arg0: i32) -> (i32, i32) {
    %c0_i32 = arith.constant 0 : i32
    %c0_i32_0 = arith.constant 0 : i32
    %c0_i32_1 = arith.constant 0 : i32
    return %c0_i32, %c0_i32_0 : i32, i32
  }
  func.func @transform_3(%arg0: i32) -> (i32, i32) {
    %c0_i32 = arith.constant 0 : i32
    %c0_i32_0 = arith.constant 0 : i32
    %c0_i32_1 = arith.constant 0 : i32
    return %c0_i32, %c0_i32_0 : i32, i32
  }
  func.func @transform_4(%arg0: i32) -> (i32, i32) {
    %c0_i32 = arith.constant 0 : i32
    %c0_i32_0 = arith.constant 0 : i32
    %c0_i32_1 = arith.constant 0 : i32
    return %c0_i32, %c0_i32_0 : i32, i32
  }
  func.func @transform_5(%arg0: i32) -> (i32, i32) {
    %c0_i32 = arith.constant 0 : i32
    %c0_i32_0 = arith.constant 0 : i32
    %c0_i32_1 = arith.constant 0 : i32
    return %c0_i32, %c0_i32_0 : i32, i32
  }
  func.func @transform_6(%arg0: i32) -> (i32, i32) {
    %c0_i32 = arith.constant 0 : i32
    %c0_i32_0 = arith.constant 0 : i32
    %c0_i32_1 = arith.constant 0 : i32
    return %c0_i32, %c0_i32_0 : i32, i32
  }
  func.func @transform_7(%arg0: i32) -> (i32, i32) {
    %c0_i32 = arith.constant 0 : i32
    %c0_i32_0 = arith.constant 0 : i32
    %c0_i32_1 = arith.constant 0 : i32
    return %c0_i32, %c0_i32_0 : i32, i32
  }
  func.func @transform_8(%arg0: i32) -> (i32, i32, i32) {
    %c0_i32 = arith.constant 0 : i32
    %c0_i32_0 = arith.constant 0 : i32
    %c0_i32_1 = arith.constant 0 : i32
    return %arg0, %c0_i32, %c0_i32_0 : i32, i32, i32
  }
}

</mosaic_0001>

<bundles_post_ra>
// kernel: dgwgan_forward.4
= control target key start
LH: loop header
LB: loop body
LE: loop exit
PB: predicated region body
PF: predicated region fallthrough
CT: control target
= control target key end

     0   :  { %s668_s12 = smov 0   ;;  %s670_s13 = smov 0   ;;  %s764_s0 = inlined_call_operand.vmem [shape: bf16[2,80,1024], index: 0, kind: input, shape index: {}]   ;;  %s765_s1 = inlined_call_operand.vmem [shape: bf16[8,80], index: 1, kind: input, shape index: {}]   ;;  %s766_s2 = inlined_call_operand.vmem [shape: f32[8,1], index: 2, kind: input, shape index: {}]   ;;  %s767_s3 = inlined_call_operand.vmem [shape: bf16[2,8,1024], index: 3, kind: output, shape index: {}]  }
   0x1   :  { %s672_s14 = smov 0   ;;  %s674_s15 = smov 0  }
   0x2   :  { %s676_s16 = smov 0   ;;  %s678_s17 = smov 0  }
   0x3   :  { %s680_s18 = smov 0  }
   0x4 LB: > { %s22_s19 = sadd.s32 1, %s637_s16  ;;  %s25_s20 = sadd.s32 1, %s641_s17  ;;  %s645_s18 = sphi %s680_s18, %s13_s18   ;;  %s641_s17 = sphi %s678_s17, %s773_s17   ;;  %s637_s16 = sphi %s676_s16, %s772_s16   ;;  %s633_s15 = sphi %s674_s15, %s771_s15   ;;  %s629_s14 = sphi %s672_s14, %s770_s14   ;;  %s625_s13 = sphi %s670_s13, %s769_s13   ;;  %s621_s12 = sphi %s668_s12, %s768_s12  }
   0x5   : > { %p23_p0 = scmp.ge.s32.totalorder %s22_s19, 4  ;;  %p41_p1 = scmp.ne.s32.totalorder %s625_s13, %s621_s12 }
   0x6   : > { %p42_p2 = scmp.eq.s32.totalorder %s645_s18, 0  ;;  %s34_s24 = sadd.s32 1, %s625_s13 }
   0x7   : > { %s775_s19 = smov (%p23_p0, %s22_s19), 0  ;;  %s777_s20 = smov (!%p23_p0, %s25_s20), %s641_s17 }
   0x8   : > { %p43_p3 = por %p42_p2, %p41_p1  ;;  %p27_p4 = scmp.ge.s32.totalorder %s777_s20, 2 }
   0x9   : > { %s30_s21 = ssub.s32 %s637_s16, %s775_s19  ;;  %p493_p6 = scmp.ge.s32.totalorder %s645_s18, 8 }
   0xa   : > { %s779_s20 = smov (%p27_p4, %s777_s20), 0 }
   0xb   : > { %s29_s22 = ssub.s32 %s641_s17, %s779_s20  ;;  %143 = sbr.rel (%p493_p6) target bundleno = 34 (0x22), region = 24 }
   0xc   : > { %s31_s23 = sor.u32 %s30_s21, %s29_s22 }
   0xd   : > { %p32_p5 = scmp.eq.s32.totalorder %s31_s23, 0 }
   0xf   : > { %s719_s25 = scalar_select %p32_p5, %s625_s13, %s34_s24  }
  0x10   : > { %146 = sbr.rel (!%p43_p3) target bundleno = 34 (0x22), region = 28  ;;  %s148_s26 = sand.u32 (%p43_p3), 1, %s625_s13  }
  0x11   : > { %s515_s27 = smul.u32 (%p43_p3), 80, %s148_s26  ;;  %s494_s28 = sshll.u32 (%p43_p3), %s637_s16, 1 }
  0x12   : > { %s516_s29 = smul.u32 (%p43_p3), 80, %s641_s17 }
  0x13   : > { %s150_s8 = scalar_lea.vmem (%p43_p3), [#allocation2], %s515_s27 }
  0x14   : > { %s153_s30 = sadd.s32 (%p43_p3), %s516_s29, %s494_s28 }
  0x15   : > { %s495_s4 = sshll.u32 %s153_s30, 2 }
  0x16   : > { %s155_s7 = scalar_lea.vmem %s764_s0, %s495_s4 }
  0x17   : > { %v202_v0 = vld [vmem:[%s155_s7] sm:$0xff] }
  0x18   : > { %v204_v1 = vld [vmem:[%s155_s7 + $0x20] sm:$0xff]  ;;  %203 = vst [vmem:[%s150_s8] sm:$0xff] %v202_v0 }
  0x19   : > { %v206_v2 = vld [vmem:[%s155_s7 + $0x40] sm:$0xff]  ;;  %205 = vst [vmem:[%s150_s8 + $0x8] sm:$0xff] %v204_v1 }
  0x1a   : > { %207 = vst [vmem:[%s150_s8 + $0x10] sm:$0xff] %v206_v2  ;;  %v208_v3 = vld [vmem:[%s155_s7 + $0x60] sm:$0xff] }
  0x1b   : > { %v210_v4 = vld [vmem:[%s155_s7 + $0x80] sm:$0xff]  ;;  %209 = vst [vmem:[%s150_s8 + $0x18] sm:$0xff] %v208_v3 }
  0x1c   : > { %v212_v5 = vld [vmem:[%s155_s7 + $0xa0] sm:$0xff]  ;;  %211 = vst [vmem:[%s150_s8 + $0x20] sm:$0xff] %v210_v4 }
  0x1d   : > { %213 = vst [vmem:[%s150_s8 + $0x28] sm:$0xff] %v212_v5  ;;  %v214_v6 = vld [vmem:[%s155_s7 + $0xc0] sm:$0xff] }
  0x1e   : > { %v216_v7 = vld [vmem:[%s155_s7 + $0xe0] sm:$0xff]  ;;  %215 = vst [vmem:[%s150_s8 + $0x30] sm:$0xff] %v214_v6 }
  0x1f   : > { %v218_v8 = vld [vmem:[%s155_s7 + $0x100] sm:$0xff]  ;;  %217 = vst [vmem:[%s150_s8 + $0x38] sm:$0xff] %v216_v7 }
  0x20   : > { %219 = vst [vmem:[%s150_s8 + $0x40] sm:$0xff] %v218_v8  ;;  %v220_v9 = vld [vmem:[%s155_s7 + $0x120] sm:$0xff] }
  0x21   : > { %221 = vst [vmem:[%s150_s8 + $0x48] sm:$0xff] %v220_v9 }
  0x22 PF: > { %p496_p7 = scmp.ge.s32.totalorder %s645_s18, 1  ;;  %p226_p8 = scmp.lt.s32.totalorder %s645_s18, 9 }
  0x24   : > { %p227_p9 = pnand %p496_p7, %p226_p8 }
  0x25   : > { %s233_s9 = sand.u32 (!%p227_p9), 1, %s621_s12   ;;  %s497_s24 = sshll.u32 (!%p227_p9), %s629_s14, 1 }
  0x26   : > { %230 = sbr.rel (%p227_p9) target bundleno = 269 (0x10d), region = 66  ;;  %p262_p10 = scmp.lt.s32.totalorder (!%p227_p9), %s633_s15, 1 }
  0x27   : > { %s517_s21 = smul.u32 (!%p227_p9), 80, %s233_s9  ;;  %p264_p11 = scmp.lt.s32.totalorder (!%p227_p9), %s497_s24, 7 }
  0x29   : > { %s235_s22 = scalar_lea.vmem (!%p227_p9), [#allocation2], %s517_s21 }
  0x2b   : > { %v283_v10 = vld [vmem:[%s766_s2] sm:$0xff]  ;;  %v647_v11 = vmov 0   ;;  %vm339_vm0 = vcmask 654336   ;;  %s781_s15 = smov (!%p262_p10, %s633_s15), 1  ;;  %s783_s24 = smov (!%p264_p11, %s497_s24), 7 }
  0x2c   : > { %375 = vmatprep.mubr.bf16.mxu0 %v647_v11  ;;  %575 = vset.pattern.permute.xlu0 %v647_v11  ;;  %v576_v12 = vld [vmem:[%s235_s22 + $0x44] ss:$8 sps:$4 sm:$0xff]   ;;  %v578_v13 = vld [vmem:[%s235_s22 + $0x40] ss:$8 sps:$4 sm:$0xff]   ;;  %v579_v14 = vld [vmem:[%s235_s22 + $0x34] ss:$8 sps:$4 sm:$0xff]  }
  0x2d   : > { %286 = vperm.xlu0 %575, %v283_v10   ;;  %349 = vmatprep.subr.bf16.mxu0 %v576_v12  ;;  %v581_v15 = vld [vmem:[%s235_s22 + $0x30] ss:$8 sps:$4 sm:$0xff]   ;;  %v582_v16 = vld [vmem:[%s235_s22 + $0x24] ss:$8 sps:$4 sm:$0xff]   ;;  %v584_v17 = vld [vmem:[%s235_s22 + $0x20] ss:$8 sps:$4 sm:$0xff]  }
  0x2e   : > { %350 = vmatpush1.bf16.msra.mxu0 %v578_v13  ;;  %v585_v18 = vld [vmem:[%s235_s22 + $0x14] ss:$8 sps:$4 sm:$0xff]   ;;  %v587_v19 = vld [vmem:[%s235_s22 + $0x10] ss:$8 sps:$4 sm:$0xff]   ;;  %v588_v20 = vld [vmem:[%s235_s22 + $0x4] ss:$8 sps:$4 sm:$0xff]  }
  0x2f   : > { %351 = vmatprep.subr.bf16.mxu0 %v579_v14  ;;  %v590_v21 = vld [vmem:[%s235_s22] ss:$8 sps:$4 sm:$0xff]   ;;  %s498_s26 = sshll.u32 %s781_s15, 3 }
  0x30   : > { %v272_v22 = vld [vmem:[%s765_s1] sm:$0xf]  ;;  %s267_s27 = sadd.s32 %s498_s26, %s783_s24 }
  0x31   : > { %s499_s28 = sshll.u32 %s267_s27, 2 }
  0x32   : > { %352 = vmatpush1.bf16.msra.mxu0 %v581_v15  ;;  %s269_s30 = scalar_lea.vmem %s767_s3, %s499_s28 }
  0x33   : > { %353 = vmatprep.subr.bf16.mxu0 %v582_v16 }
  0x36   : > { %354 = vmatpush1.bf16.msra.mxu0 %v584_v17 }
  0x37   : > { %355 = vmatprep.subr.bf16.mxu0 %v585_v18 }
  0x3a   : > { %356 = vmatpush1.bf16.msra.mxu0 %v587_v19 }
  0x3b   : > { %357 = vmatprep.subr.bf16.mxu0 %v588_v20 }
  0x3e   : > { %358 = vmatpush1.bf16.msra.mxu0 %v590_v21 }
  0x41   : > { %510 = vmatmul.mubr.msk.bf16.vlgmr.msra.gmra.mxu0 %vm339_vm0, %v272_v22 }
  0xa8   : > { %v287_v23 = vpop.permute.xlu0 %286 }
 0x101   : > { %v377_v24 = vpop.f32.mrf.mxu0 }
 0x102   : > { %v378_v25 = vadd.f32 %v377_v24, %v287_v23 }
 0x103   : > { %v379_v26 = vpop.f32.mrf.mxu0 }
 0x104   : > { %v384_v27 = vmul.f32 0.2, %v378_v25  ;;  %v380_v28 = vadd.f32 %v379_v26, %v287_v23 }
 0x105   : > { %v381_v29 = vpop.f32.mrf.mxu0 }
 0x106   : > { %v385_v30 = vmul.f32 0.2, %v380_v28  ;;  %v386_v32 = vmax.f32 %v378_v25, %v384_v27 }
 0x107   : > { %v382_v31 = vpop.f32.mrf.mxu0 }
 0x108   : > { %v387_v33 = vmax.f32 %v380_v28, %v385_v30 }
 0x10a   : > { %v514_v34 = vpack.c.bf16 %v387_v33, %v386_v32 }
 0x10c   : > { %396 = vst [vmem:[%s269_s30] sm:$0xff] %v514_v34 }
 0x10d PF: > { %s13_s18 = sadd.s32 1, %s645_s18   ;;  %s768_s12 = smov %s625_s13 }
 0x10e   : > { %p10_p12 = scmp.ge.s32.totalorder %s13_s18, 10   ;;  %s769_s13 = smov %s719_s25 }
 0x10f   : > { %s770_s14 = smov %s637_s16  ;;  %s771_s15 = smov %s641_s17 }
 0x110   : > { %s772_s16 = smov %s775_s19  ;;  %s773_s17 = smov %s779_s20 }
 0x111   :  { %12 = sbr.rel (!%p10_p12) target bundleno = 4 (0x4), region = 105 }

// kernel: dgwgan_forward.5
= control target key start
LH: loop header
LB: loop body
LE: loop exit
PB: predicated region body
PF: predicated region fallthrough
CT: control target
= control target key end

     0   :  { %s929_s18 = smov 0   ;;  %s1419_s0 = inlined_call_operand.vmem [shape: bf16[2,200,256], index: 0, kind: input, shape index: {}]   ;;  %s1420_s1 = inlined_call_operand.vmem [shape: bf16[16,200], index: 1, kind: input, shape index: {}]   ;;  %s1421_s2 = inlined_call_operand.vmem [shape: f32[16,1], index: 2, kind: input, shape index: {}]   ;;  %s1422_s3 = inlined_call_operand.vmem [shape: f32[16,1], index: 3, kind: input, shape index: {}]   ;;  %s1423_s4 = inlined_call_operand.vmem [shape: f32[256,256], index: 4, kind: input, shape index: {}]   ;;  %s1424_s5 = inlined_call_operand.vmem [shape: bf16[2,16,256], index: 5, kind: output, shape index: {}]  }
   0x1 LB: > { %s784_s19 = sadd.s32 4294967295, %s896_s18   ;;  %p788_p0 = scmp.ge.s32.totalorder %s896_s18, 1  ;;  %s896_s18 = sphi %s929_s18, %s15_s18  }
   0x2   : > { %p187_p1 = scmp.lt.s32.totalorder %s896_s18, 3 }
   0x4   : > { %p188_p2 = pnand %p788_p0, %p187_p1 }
   0x5   : > { %p215_p3 = scmp.lt.s32.totalorder (!%p188_p2), %s784_s19, 1 }
   0x6   : > { %191 = sbr.rel (%p188_p2) target bundleno = 692 (0x2b4), region = 40 }
   0xb   : > { %v881_v0 = vld [vmem:[%s1420_s1 + $0x4] ss:$8 sps:$4 sm:$0xff]   ;;  %vm387_vm0 = vcmask 588800   ;;  %v943_v1 = vld [vmem:[%s1423_s4 + $0xf8] sm:$0xff]  ;;  %v948_v2 = vld [vmem:[%s1423_s4 + $0xf0] sm:$0xff]  ;;  %s1426_s19 = smov (!%p215_p3, %s784_s19), 1 }
   0xc   : > { %505 = vmatprep.subr.mxu1 %v943_v1  ;;  %v956_v3 = vld [vmem:[%s1423_s4 + $0xe8] sm:$0xff]  ;;  %v961_v4 = vld [vmem:[%s1423_s4 + $0xe0] sm:$0xff]  ;;  %821 = vmatprep.mubr.msk.bf16.mxu0 %vm387_vm0, %v881_v0  ;;  %v967_v5 = vld [vmem:[%s1423_s4 + $0xd8] sm:$0xff]  ;;  %s829_s7 = smul.u32 200, %s1426_s19  ;;  %vm391_vm1 = vcmask 1043456   ;;  %s826_s29 = sshll.u32 %s1426_s19, 4 }
   0xd   : > { %506 = vmatpush1.msra.mxu1 %v948_v2  ;;  %v974_v6 = vld [vmem:[%s1423_s4 + $0xd0] sm:$0xff]  ;;  %v980_v7 = vld [vmem:[%s1423_s4 + $0xc8] sm:$0xff]  ;;  %v991_v8 = vld [vmem:[%s1423_s4 + $0xc0] sm:$0xff] }
   0xe   : > { %507 = vmatprep.subr.mxu1 %v956_v3  ;;  %s985_s14 = scalar_lea.vmem %s1419_s0, %s829_s7  ;;  %v996_v9 = vld [vmem:[%s1423_s4 + $0xb8] sm:$0xff]  ;;  %v1001_v10 = vld [vmem:[%s1423_s4 + $0xb0] sm:$0xff]  ;;  %v1008_v12 = vld [vmem:[%s1423_s4 + $0xa8] sm:$0xff]  ;;  %s224_s7 = scalar_lea.vmem %s1424_s5, %s826_s29 }
   0xf   : > { %508 = vmatpush1.msra.mxu1 %v961_v4  ;;  %v841_v11 = vld [vmem:[%s985_s14 + $0x74] ss:$8 sps:$4 sm:$0xff]   ;;  %v843_v13 = vld [vmem:[%s985_s14 + $0x70] ss:$8 sps:$4 sm:$0xff]   ;;  %v844_v14 = vld [vmem:[%s985_s14 + $0x64] ss:$8 sps:$4 sm:$0xff]  }
  0x10   : > { %509 = vmatprep.subr.mxu1 %v967_v5  ;;  %398 = vmatprep.subr.bf16.mxu0 %v841_v11  ;;  %v1017_v15 = vld [vmem:[%s1423_s4 + $0xa0] sm:$0xff]  ;;  %v1024_v17 = vld [vmem:[%s1423_s4 + $0x98] sm:$0xff]  ;;  %v1032_v19 = vld [vmem:[%s1423_s4 + $0x90] sm:$0xff] }
  0x11   : > { %510 = vmatpush1.msra.mxu1 %v974_v6  ;;  %399 = vmatpush1.bf16.msra.mxu0 %v843_v13  ;;  %v846_v16 = vld [vmem:[%s985_s14 + $0x60] ss:$8 sps:$4 sm:$0xff]   ;;  %v847_v18 = vld [vmem:[%s985_s14 + $0x54] ss:$8 sps:$4 sm:$0xff]   ;;  %v849_v22 = vld [vmem:[%s985_s14 + $0x50] ss:$8 sps:$4 sm:$0xff]  }
  0x12   : > { %511 = vmatprep.subr.mxu1 %v980_v7  ;;  %400 = vmatprep.subr.bf16.mxu0 %v844_v14  ;;  %v1038_v20 = vld [vmem:[%s1423_s4 + $0x88] sm:$0xff]  ;;  %v1043_v21 = vld [vmem:[%s1423_s4 + $0x80] sm:$0xff]  ;;  %v1050_v23 = vld [vmem:[%s1423_s4 + $0x78] sm:$0xff] }
  0x13   : > { %512 = vmatpush1.msra.mxu1 %v991_v8  ;;  %v850_v24 = vld [vmem:[%s985_s14 + $0x44] ss:$8 sps:$4 sm:$0xff]   ;;  %v852_v25 = vld [vmem:[%s985_s14 + $0x40] ss:$8 sps:$4 sm:$0xff]   ;;  %v853_v26 = vld [vmem:[%s985_s14 + $0x34] ss:$8 sps:$4 sm:$0xff]  }
  0x14   : > { %513 = vmatprep.subr.mxu1 %v996_v9  ;;  %v855_v27 = vld [vmem:[%s985_s14 + $0x30] ss:$8 sps:$4 sm:$0xff]   ;;  %v856_v28 = vld [vmem:[%s985_s14 + $0x24] ss:$8 sps:$4 sm:$0xff]   ;;  %v858_v34 = vld [vmem:[%s985_s14 + $0x20] ss:$8 sps:$4 sm:$0xff]  }
  0x15   : > { %514 = vmatpush1.msra.mxu1 %v1001_v10  ;;  %401 = vmatpush1.bf16.msra.mxu0 %v846_v16  ;;  %v1064_v29 = vld [vmem:[%s1423_s4 + $0x70] sm:$0xff]  ;;  %v1069_v30 = vld [vmem:[%s1423_s4 + $0x68] sm:$0xff]  ;;  %v1075_v31 = vld [vmem:[%s1423_s4 + $0x60] sm:$0xff] }
  0x16   : > { %515 = vmatprep.subr.mxu1 %v1008_v12  ;;  %402 = vmatprep.subr.bf16.mxu0 %v847_v18  ;;  %v1080_v32 = vld [vmem:[%s1423_s4 + $0x58] sm:$0xff]  ;;  %v1086_v33 = vld [vmem:[%s1423_s4 + $0x50] sm:$0xff]  ;;  %v1093_v35 = vld [vmem:[%s1423_s4 + $0x48] sm:$0xff] }
  0x17   : > { %516 = vmatpush1.msra.mxu1 %v1017_v15  ;;  %v859_v36 = vld [vmem:[%s985_s14 + $0x14] ss:$8 sps:$4 sm:$0xff]   ;;  %v1100_v37 = vld [vmem:[%s1423_s4 + $0x40] sm:$0xff]  ;;  %v861_v40 = vld [vmem:[%s985_s14 + $0x10] ss:$8 sps:$4 sm:$0xff]  }
  0x18   : > { %517 = vmatprep.subr.mxu1 %v1024_v17  ;;  %v1106_v38 = vld [vmem:[%s1423_s4 + $0x38] sm:$0xff]  ;;  %v1112_v39 = vld [vmem:[%s1423_s4 + $0x30] sm:$0xff]  ;;  %v1119_v41 = vld [vmem:[%s1423_s4 + $0x28] sm:$0xff] }
  0x19   : > { %518 = vmatpush1.msra.mxu1 %v1032_v19  ;;  %403 = vmatpush1.bf16.msra.mxu0 %v849_v22  ;;  %v862_v42 = vld [vmem:[%s985_s14 + $0x4] ss:$8 sps:$4 sm:$0xff]   ;;  %v1133_v45 = vld [vmem:[%s1423_s4 + $0x18] sm:$0xff]  ;;  %v1139_v46 = vld [vmem:[%s1423_s4 + $0x10] sm:$0xff] }
  0x1a   : > { %519 = vmatprep.subr.mxu1 %v1038_v20  ;;  %404 = vmatprep.subr.bf16.mxu0 %v850_v24  ;;  %v1126_v43 = vld [vmem:[%s1423_s4 + $0x20] sm:$0xff]  ;;  %v1146_v48 = vld [vmem:[%s1423_s4 + $0x8] sm:$0xff]  ;;  %v1158_v52 = vld [vmem:[%s1423_s4 + $0x1f8] sm:$0xff] }
  0x1b   : > { %520 = vmatpush1.msra.mxu1 %v1043_v21  ;;  %v252_v44 = vld [vmem:[%s985_s14 + $0xc0] sm:$0xff]  ;;  %v1164_v53 = vld [vmem:[%s1423_s4 + $0x1f0] sm:$0xff]  ;;  %v1170_v54 = vld [vmem:[%s1423_s4 + $0x1e8] sm:$0xff] }
  0x1c   : > { %521 = vmatprep.subr.mxu1 %v1050_v23  ;;  %v864_v47 = vld [vmem:[%s985_s14] ss:$8 sps:$4 sm:$0xff]   ;;  %v819_v49 = vcombine.high %v252_v44, %v252_v44  ;;  %v818_v50 = vcombine.low %v252_v44, %v252_v44  ;;  %v867_v56 = vld [vmem:[%s985_s14 + $0xb4] ss:$8 sps:$4 sm:$0xff]   ;;  %v869_v60 = vld [vmem:[%s985_s14 + $0xb0] ss:$8 sps:$4 sm:$0xff]  }
  0x1d   : > { %405 = vmatpush1.bf16.msra.mxu0 %v852_v25  ;;  %522 = vmatpush1.msra.mxu1 %v1064_v29  ;;  %v1152_v51 = vld [vmem:[%s1423_s4] sm:$0xff]  ;;  %v1183_v58 = vld [vmem:[%s1423_s4 + $0x1d8] sm:$0xff]  ;;  %v1189_v59 = vld [vmem:[%s1423_s4 + $0x1d0] sm:$0xff] }
  0x1e   : > { %406 = vmatprep.subr.bf16.mxu0 %v853_v26  ;;  %523 = vmatprep.subr.mxu1 %v1069_v30  ;;  %v393_v55 = vsel %vm391_vm1, %v818_v50, 0  ;;  %v1177_v57 = vld [vmem:[%s1423_s4 + $0x1e0] sm:$0xff]  ;;  %v1196_v61 = vld [vmem:[%s1423_s4 + $0x1c8] sm:$0xff]  ;;  %v1209_v0 = vld [vmem:[%s1423_s4 + $0x1b8] sm:$0xff] }
  0x1f   : > { %524 = vmatpush1.msra.mxu1 %v1075_v31  ;;  %v870_v62 = vld [vmem:[%s985_s14 + $0xa4] ss:$8 sps:$4 sm:$0xff]   ;;  %v1215_v11 = vld [vmem:[%s1423_s4 + $0x1b0] sm:$0xff]  ;;  %v872_v13 = vld [vmem:[%s985_s14 + $0xa0] ss:$8 sps:$4 sm:$0xff]  }
  0x20   : > { %525 = vmatprep.subr.mxu1 %v1080_v32  ;;  %v1203_v63 = vld [vmem:[%s1423_s4 + $0x1c0] sm:$0xff]  ;;  %v1222_v14 = vld [vmem:[%s1423_s4 + $0x1a8] sm:$0xff]  ;;  %v873_v16 = vld [vmem:[%s985_s14 + $0x94] ss:$8 sps:$4 sm:$0xff]  }
  0x21   : > { %407 = vmatpush1.bf16.msra.mxu0 %v855_v27  ;;  %526 = vmatpush1.msra.mxu1 %v1086_v33  ;;  %v1229_v18 = vld [vmem:[%s1423_s4 + $0x1a0] sm:$0xff]  ;;  %v1235_v22 = vld [vmem:[%s1423_s4 + $0x198] sm:$0xff]  ;;  %v1241_v24 = vld [vmem:[%s1423_s4 + $0x190] sm:$0xff] }
  0x22   : > { %408 = vmatprep.subr.bf16.mxu0 %v856_v28  ;;  %527 = vmatprep.subr.mxu1 %v1093_v35  ;;  %v875_v25 = vld [vmem:[%s985_s14 + $0x90] ss:$8 sps:$4 sm:$0xff]   ;;  %v1248_v26 = vld [vmem:[%s1423_s4 + $0x188] sm:$0xff]  ;;  %v1255_v28 = vld [vmem:[%s1423_s4 + $0x180] sm:$0xff] }
  0x23   : > { %528 = vmatpush1.msra.mxu1 %v1100_v37  ;;  %v876_v27 = vld [vmem:[%s985_s14 + $0x84] ss:$8 sps:$4 sm:$0xff]   ;;  %v1295_v50 = vld [vmem:[%s1423_s4 + $0x150] sm:$0xff] }
  0x24   : > { %529 = vmatprep.subr.mxu1 %v1106_v38  ;;  %v1280_v44 = vld [vmem:[%s1423_s4 + $0x160] sm:$0xff] }
  0x25   : > { %409 = vmatpush1.bf16.msra.mxu0 %v858_v34  ;;  %530 = vmatpush1.msra.mxu1 %v1112_v39  ;;  %v1261_v34 = vld [vmem:[%s1423_s4 + $0x178] sm:$0xff] }
  0x26   : > { %410 = vmatprep.subr.bf16.mxu0 %v859_v36  ;;  %531 = vmatprep.subr.mxu1 %v1119_v41  ;;  %v1267_v36 = vld [vmem:[%s1423_s4 + $0x170] sm:$0xff] }
  0x27   : > { %532 = vmatpush1.msra.mxu1 %v1126_v43 }
  0x28   : > { %533 = vmatprep.subr.mxu1 %v1133_v45 }
  0x29   : > { %411 = vmatpush1.bf16.msra.mxu0 %v861_v40  ;;  %534 = vmatpush1.msra.mxu1 %v1139_v46  ;;  %v878_v40 = vld [vmem:[%s985_s14 + $0x80] ss:$8 sps:$4 sm:$0xff]  }
  0x2a   : > { %412 = vmatprep.subr.bf16.mxu0 %v862_v42  ;;  %535 = vmatprep.subr.mxu1 %v1146_v48  ;;  %v1274_v42 = vld [vmem:[%s1423_s4 + $0x168] sm:$0xff] }
  0x2b   : > { %536 = vmatpush1.msra.mxu1 %v1152_v51 }
  0x2c   : > { %537 = vmatprep.subr.mxu1 %v1158_v52 }
  0x2d   : > { %413 = vmatpush1.bf16.msra.mxu0 %v864_v47  ;;  %538 = vmatpush2.msra.mxu1 %v1164_v53  ;;  %v1286_v47 = vld [vmem:[%s1423_s4 + $0x158] sm:$0xff] }
  0x2e   : > { %820 = vmatprep.subr.msk.bf16.mxu0 %vm391_vm1, %v819_v49  ;;  %539 = vmatprep.subr.mxu1 %v1170_v54  ;;  %v879_v49 = vld [vmem:[%s1420_s1] ss:$8 sps:$4 sm:$0xff]  }
  0x2f   : > { %540 = vmatpush2.msra.mxu1 %v1177_v57 }
  0x30   : > { %541 = vmatprep.subr.mxu1 %v1183_v58 }
  0x31   : > { %421 = vmatpush2.bf16.msra.mxu0 %v393_v55  ;;  %542 = vmatpush2.msra.mxu1 %v1189_v59  ;;  %v1301_v55 = vld [vmem:[%s1423_s4 + $0x148] sm:$0xff] }
  0x32   : > { %422 = vmatprep.subr.bf16.mxu0 %v867_v56  ;;  %543 = vmatprep.subr.mxu1 %v1196_v61  ;;  %v1307_v56 = vld [vmem:[%s1423_s4 + $0x140] sm:$0xff] }
  0x33   : > { %544 = vmatpush2.msra.mxu1 %v1203_v63 }
  0x34   : > { %545 = vmatprep.subr.mxu1 %v1209_v0 }
  0x35   : > { %423 = vmatpush2.bf16.msra.mxu0 %v869_v60  ;;  %546 = vmatpush2.msra.mxu1 %v1215_v11  ;;  %v1314_v60 = vld [vmem:[%s1423_s4 + $0x138] sm:$0xff] }
  0x36   : > { %424 = vmatprep.subr.bf16.mxu0 %v870_v62  ;;  %547 = vmatprep.subr.mxu1 %v1222_v14  ;;  %v1320_v62 = vld [vmem:[%s1423_s4 + $0x130] sm:$0xff] }
  0x37   : > { %548 = vmatpush2.msra.mxu1 %v1229_v18 }
  0x38   : > { %549 = vmatprep.subr.mxu1 %v1235_v22 }
  0x39   : > { %425 = vmatpush2.bf16.msra.mxu0 %v872_v13  ;;  %550 = vmatpush2.msra.mxu1 %v1241_v24  ;;  %v477_v13 = vld [vmem:[%s1423_s4 + $0x120] sm:$0xff] }
  0x3a   : > { %426 = vmatprep.subr.bf16.mxu0 %v873_v16  ;;  %551 = vmatprep.subr.mxu1 %v1248_v26 }
  0x3b   : > { %552 = vmatpush2.msra.mxu1 %v1255_v28 }
  0x3c   : > { %553 = vmatprep.subr.mxu1 %v1261_v34 }
  0x3d   : > { %427 = vmatpush2.bf16.msra.mxu0 %v875_v25  ;;  %554 = vmatpush2.msra.mxu1 %v1267_v36 }
  0x3e   : > { %428 = vmatprep.subr.bf16.mxu0 %v876_v27  ;;  %555 = vmatprep.subr.mxu1 %v1274_v42 }
  0x3f   : > { %556 = vmatpush2.msra.mxu1 %v1280_v44 }
  0x40   : > { %557 = vmatprep.subr.mxu1 %v1286_v47 }
  0x41   : > { %429 = vmatpush2.bf16.msra.mxu0 %v878_v40  ;;  %558 = vmatpush2.msra.mxu1 %v1295_v50 }
  0x42   : > { %592 = vmatprep.subr.mxu0 %v943_v1  ;;  %559 = vmatprep.subr.mxu1 %v1301_v55  ;;  %v478_v1 = vld [vmem:[%s1423_s4 + $0x128] sm:$0xff] }
  0x43   : > { %560 = vmatpush2.msra.mxu1 %v1307_v56 }
  0x44   : > { %431 = vmatmul.mubr.bf16.vlgmr.msra.gmra.mxu0 %v879_v49  ;;  %561 = vmatprep.subr.mxu1 %v1314_v60 }
  0x45   : > { %593 = vmatpush1.msra.mxu0 %v948_v2  ;;  %562 = vmatpush2.msra.mxu1 %v1320_v62  ;;  %v476_v2 = vld [vmem:[%s1423_s4 + $0x118] sm:$0xff] }
  0x46   : > { %594 = vmatprep.subr.mxu0 %v956_v3  ;;  %563 = vmatprep.subr.mxu1 %v478_v1  ;;  %v475_v3 = vld [vmem:[%s1423_s4 + $0x110] sm:$0xff] }
  0x47   : > { %595 = vmatpush1.msra.mxu0 %v961_v4  ;;  %564 = vmatpush2.msra.mxu1 %v477_v13  ;;  %v474_v4 = vld [vmem:[%s1423_s4 + $0x108] sm:$0xff] }
  0x48   : > { %596 = vmatprep.subr.mxu0 %v967_v5  ;;  %565 = vmatprep.subr.mxu1 %v476_v2  ;;  %v473_v5 = vld [vmem:[%s1423_s4 + $0x100] sm:$0xff] }
  0x49   : > { %597 = vmatpush1.msra.mxu0 %v974_v6  ;;  %566 = vmatpush2.msra.mxu1 %v475_v3 }
  0x4a   : > { %598 = vmatprep.subr.mxu0 %v980_v7  ;;  %567 = vmatprep.subr.mxu1 %v474_v4 }
  0x4b   : > { %599 = vmatpush1.msra.mxu0 %v991_v8  ;;  %568 = vmatpush2.msra.mxu1 %v473_v5 }
  0x4c   : > { %600 = vmatprep.subr.mxu0 %v996_v9 }
  0x4d   : > { %601 = vmatpush1.msra.mxu0 %v1001_v10  ;;  %v590_v10 = vld [vmem:[%s1421_s2] sm:$0xff] }
  0x4e   : > { %602 = vmatprep.subr.mxu0 %v1008_v12  ;;  %v691_v12 = vld [vmem:[%s1422_s3] sm:$0xff] }
  0x4f   : > { %603 = vmatpush1.msra.mxu0 %v1017_v15  ;;  %v898_v15 = vmov 0  }
  0x50   : > { %604 = vmatprep.subr.mxu0 %v1024_v17  ;;  %839 = vset.pattern.permute.xlu0 %v898_v15  ;;  %v591_v17 = vld [vmem:[%s1421_s2 + $0x8] sm:$0xff] }
  0x51   : > { %605 = vmatpush1.msra.mxu0 %v1032_v19  ;;  %840 = vset.pattern.permute.xlu1 %v898_v15  ;;  %v692_v19 = vld [vmem:[%s1422_s3 + $0x8] sm:$0xff] }
  0x52   : > { %606 = vmatprep.subr.mxu0 %v1038_v20  ;;  %675 = vperm.xlu0 %839, %v590_v10  }
  0x53   : > { %607 = vmatpush1.msra.mxu0 %v1043_v21  ;;  %695 = vperm.xlu1 %840, %v691_v12  }
  0x54   : > { %608 = vmatprep.subr.mxu0 %v1050_v23 }
  0x55   : > { %609 = vmatpush1.msra.mxu0 %v1064_v29 }
  0x56   : > { %610 = vmatprep.subr.mxu0 %v1069_v30  ;;  %680 = vperm.xlu0 %839, %v591_v17  }
  0x57   : > { %611 = vmatpush1.msra.mxu0 %v1075_v31  ;;  %700 = vperm.xlu1 %840, %v692_v19  }
  0x58   : > { %612 = vmatprep.subr.mxu0 %v1080_v32 }
  0x59   : > { %613 = vmatpush1.msra.mxu0 %v1086_v33 }
  0x5a   : > { %614 = vmatprep.subr.mxu0 %v1093_v35 }
  0x5b   : > { %615 = vmatpush1.msra.mxu0 %v1100_v37 }
  0x5c   : > { %616 = vmatprep.subr.mxu0 %v1106_v38 }
  0x5d   : > { %617 = vmatpush1.msra.mxu0 %v1112_v39 }
  0x5e   : > { %618 = vmatprep.subr.mxu0 %v1119_v41 }
  0x5f   : > { %619 = vmatpush1.msra.mxu0 %v1126_v43 }
  0x60   : > { %620 = vmatprep.subr.mxu0 %v1133_v45 }
  0x61   : > { %621 = vmatpush1.msra.mxu0 %v1139_v46 }
  0x62   : > { %622 = vmatprep.subr.mxu0 %v1146_v48 }
  0x63   : > { %623 = vmatpush1.msra.mxu0 %v1152_v51 }
  0x64   : > { %624 = vmatprep.subr.mxu0 %v1158_v52 }
  0x65   : > { %625 = vmatpush2.msra.mxu0 %v1164_v53 }
  0x66   : > { %626 = vmatprep.subr.mxu0 %v1170_v54 }
  0x67   : > { %627 = vmatpush2.msra.mxu0 %v1177_v57 }
  0x68   : > { %628 = vmatprep.subr.mxu0 %v1183_v58 }
  0x69   : > { %629 = vmatpush2.msra.mxu0 %v1189_v59 }
  0x6a   : > { %630 = vmatprep.subr.mxu0 %v1196_v61 }
  0x6b   : > { %631 = vmatpush2.msra.mxu0 %v1203_v63 }
  0x6c   : > { %632 = vmatprep.subr.mxu0 %v1209_v0 }
  0x6d   : > { %633 = vmatpush2.msra.mxu0 %v1215_v11 }
  0x6e   : > { %634 = vmatprep.subr.mxu0 %v1222_v14 }
  0x6f   : > { %635 = vmatpush2.msra.mxu0 %v1229_v18 }
  0x70   : > { %636 = vmatprep.subr.mxu0 %v1235_v22 }
  0x71   : > { %637 = vmatpush2.msra.mxu0 %v1241_v24 }
  0x72   : > { %638 = vmatprep.subr.mxu0 %v1248_v26 }
  0x73   : > { %639 = vmatpush2.msra.mxu0 %v1255_v28 }
  0x74   : > { %640 = vmatprep.subr.mxu0 %v1261_v34 }
  0x75   : > { %641 = vmatpush2.msra.mxu0 %v1267_v36 }
  0x76   : > { %642 = vmatprep.subr.mxu0 %v1274_v42 }
  0x77   : > { %643 = vmatpush2.msra.mxu0 %v1280_v44 }
  0x78   : > { %644 = vmatprep.subr.mxu0 %v1286_v47 }
  0x79   : > { %645 = vmatpush2.msra.mxu0 %v1295_v50 }
  0x7a   : > { %646 = vmatprep.subr.mxu0 %v1301_v55 }
  0x7b   : > { %647 = vmatpush2.msra.mxu0 %v1307_v56 }
  0x7c   : > { %648 = vmatprep.subr.mxu0 %v1314_v60 }
  0x7d   : > { %649 = vmatpush2.msra.mxu0 %v1320_v62 }
  0x7e   : > { %650 = vmatprep.subr.mxu0 %v478_v1 }
  0x7f   : > { %651 = vmatpush2.msra.mxu0 %v477_v13 }
  0x80   : > { %652 = vmatprep.subr.mxu0 %v476_v2 }
  0x81   : > { %653 = vmatpush2.msra.mxu0 %v475_v3 }
  0x82   : > { %654 = vmatprep.subr.mxu0 %v474_v4 }
  0x83   : > { %655 = vmatpush2.msra.mxu0 %v473_v5 }
  0xcd   : > { %v676_v54 = vpop.permute.xlu0 %675 }
  0xce   : > { %v696_v61 = vpop.permute.xlu1 %695 }
  0xd1   : > { %v681_v14 = vpop.permute.xlu0 %680 }
  0xd2   : > { %v701_v34 = vpop.permute.xlu1 %700 }
 0x104   : > { %v432_v6 = vpop.f32.mrf.mxu0 }
 0x106   : > { %v434_v7 = vpop.f32.mrf.mxu0 }
 0x107   : > { %569 = vmatprep.mubr.f32.mxu1 %v434_v7 }
 0x108   : > { %v436_v8 = vpop.f32.mrf.mxu0  ;;  %570 = vmatmul.mubr.f32.vlgmr.msra.gmra.mxu1 %v432_v6 }
 0x10a   : > { %v438_v9 = vpop.f32.mrf.mxu0 }
 0x10b   : > { %575 = vmatprep.mubr.f32.mxu1 %v438_v9 }
 0x10c   : > { %576 = vmatmul.mubr.f32.gmra.mxu1 %v436_v8 }
 0x1c8   : > { %v571_v20 = vpop.f32.mrf.mxu1 }
 0x1c9   : > { %v582_v21 = vsub.f32 %v432_v6, %v571_v20 }
 0x1ca   : > { %v573_v23 = vpop.f32.mrf.mxu1 }
 0x1cb   : > { %v583_v29 = vsub.f32 %v434_v7, %v573_v23  ;;  %v586_v32 = vmul.f32 %v582_v21, %v582_v21 }
 0x1cc   : > { %v577_v30 = vpop.f32.mrf.mxu1 }
 0x1cd   : > { %v587_v31 = vmul.f32 %v583_v29, %v583_v29  ;;  %v584_v33 = vsub.f32 %v436_v8, %v577_v30 }
 0x1ce   : > { %v579_v35 = vpop.f32.mrf.mxu1 }
 0x1cf   : > { %v585_v37 = vsub.f32 %v438_v9, %v579_v35  ;;  %656 = vmatprep.mubr.f32.mxu0 %v587_v31  ;;  %v588_v39 = vmul.f32 %v584_v33, %v584_v33 }
 0x1d0   : > { %657 = vmatmul.mubr.f32.vlgmr.msra.gmra.mxu0 %v586_v32 }
 0x1d1   : > { %v589_v38 = vmul.f32 %v585_v37, %v585_v37 }
 0x1d3   : > { %662 = vmatprep.mubr.f32.mxu0 %v589_v38 }
 0x1d4   : > { %663 = vmatmul.mubr.f32.gmra.mxu0 %v588_v39 }
 0x290   : > { %v658_v41 = vpop.f32.mrf.mxu0 }
 0x291   : > { %v659_v43 = vadd.f32 1e-05, %v658_v41 }
 0x292   : > { %v660_v45 = vpop.f32.mrf.mxu0 }
 0x293   : > { %882 = vrsqrt.f32 %v659_v43  ;;  %v661_v46 = vadd.f32 1e-05, %v660_v45 }
 0x294   : > { %v664_v48 = vpop.f32.mrf.mxu0 }
 0x295   : > { %884 = vrsqrt.f32 %v661_v46  ;;  %v665_v51 = vadd.f32 1e-05, %v664_v48 }
 0x296   : > { %v666_v52 = vpop.f32.mrf.mxu0 }
 0x297   : > { %886 = vrsqrt.f32 %v665_v51  ;;  %v667_v53 = vadd.f32 1e-05, %v666_v52 }
 0x299   : > { %888 = vrsqrt.f32 %v667_v53 }
 0x2a0   : > { %v883_v57 = vpop.eup %882 }
 0x2a1   : > { %v683_v58 = vmul.f32 %v883_v57, %v676_v54 }
 0x2a2   : > { %v885_v59 = vpop.eup %884 }
 0x2a3   : > { %v684_v63 = vmul.f32 %v885_v59, %v676_v54  ;;  %v687_v0 = vmul.f32 %v683_v58, %v582_v21 }
 0x2a4   : > { %v887_v11 = vpop.eup %886 }
 0x2a5   : > { %v688_v16 = vmul.f32 %v684_v63, %v583_v29  ;;  %v703_v18 = vadd.f32 %v696_v61, %v687_v0  ;;  %v685_v22 = vmul.f32 %v887_v11, %v681_v14 }
 0x2a6   : > { %v889_v24 = vpop.eup %888 }
 0x2a7   : > { %v704_v25 = vadd.f32 %v696_v61, %v688_v16  ;;  %v707_v26 = vmul.f32 0.2, %v703_v18  ;;  %v686_v27 = vmul.f32 %v889_v24, %v681_v14  ;;  %v689_v28 = vmul.f32 %v685_v22, %v584_v33 }
 0x2a9   : > { %v708_v36 = vmul.f32 0.2, %v704_v25  ;;  %v690_v40 = vmul.f32 %v686_v27, %v585_v37  ;;  %v705_v42 = vadd.f32 %v701_v34, %v689_v28  ;;  %v711_v44 = vmax.f32 %v703_v18, %v707_v26 }
 0x2ab   : > { %v712_v47 = vmax.f32 %v704_v25, %v708_v36  ;;  %v706_v49 = vadd.f32 %v701_v34, %v690_v40  ;;  %v709_v50 = vmul.f32 0.2, %v705_v42 }
 0x2ad   : > { %v827_v55 = vpack.c.bf16 %v712_v47, %v711_v44  ;;  %v710_v56 = vmul.f32 0.2, %v706_v49  ;;  %v713_v60 = vmax.f32 %v705_v42, %v709_v50 }
 0x2af   : > { %v714_v62 = vmax.f32 %v706_v49, %v710_v56  ;;  %727 = vst [vmem:[%s224_s7] sm:$0xff] %v827_v55 }
 0x2b1   : > { %v828_v1 = vpack.c.bf16 %v714_v62, %v713_v60 }
 0x2b3   : > { %728 = vst [vmem:[%s224_s7 + $0x8] sm:$0xff] %v828_v1 }
 0x2b4 PF: > { %s15_s18 = sadd.s32 1, %s896_s18  }
 0x2b5   : > { %p12_p4 = scmp.ge.s32.totalorder %s15_s18, 4  }
 0x2b7   :  { %14 = sbr.rel (!%p12_p4) target bundleno = 1 (0x1), region = 70 }

// kernel: dgwgan_forward.6
= control target key start
LH: loop header
LB: loop body
LE: loop exit
PB: predicated region body
PF: predicated region fallthrough
CT: control target
= control target key end

     0   :  { %v908_v0 = vmov 0   ;;  %vm267_vm0 = vcmask 130048   ;;  %s1129_s0 = inlined_call_operand.vmem [shape: bf16[1,400,128], index: 0, kind: input, shape index: {}]   ;;  %s1130_s1 = inlined_call_operand.vmem [shape: bf16[32,400], index: 1, kind: input, shape index: {}]   ;;  %s1131_s4 = inlined_call_operand.vmem [shape: f32[128,128], index: 4, kind: input, shape index: {}]   ;;  %s1132_s2 = inlined_call_operand.vmem [shape: f32[32,1], index: 2, kind: input, shape index: {}]   ;;  %s1133_s3 = inlined_call_operand.vmem [shape: f32[32,1], index: 3, kind: input, shape index: {}]   ;;  %s1134_s5 = inlined_call_operand.vmem [shape: bf16[1,32,128], index: 5, kind: output, shape index: {}]  }
   0x1   :  { %323 = vmatprep.subr.bf16.mxu1 %v908_v0  ;;  %v863_v1 = vld [vmem:[%s1129_s0 + $0x78] sm:$0xff]   ;;  %862 = vset.pattern.permute.xlu1 %v908_v0  ;;  %v866_v4 = vld [vmem:[%s1129_s0 + $0x70] sm:$0xff]   ;;  %v869_v7 = vld [vmem:[%s1129_s0 + $0x68] sm:$0xff]  }
   0x2   :  { %v864_v2 = vld [vmem:[%s1129_s0 + $0xb8] sm:$0xff]   ;;  %861 = vset.pattern.permute.xlu0 %v908_v0  ;;  %716 = vmatprep.subr.bf16.mxu0 %v863_v1  ;;  %v867_v5 = vld [vmem:[%s1129_s0 + $0xb0] sm:$0xff]   ;;  %v870_v8 = vld [vmem:[%s1129_s0 + $0xa8] sm:$0xff]  }
   0x3   :  { %v865_v3 = vld [vmem:[%s1129_s0 + $0x38] sm:$0xff]   ;;  %324 = vmatpush1.bf16.msra.mxu1 %v864_v2  ;;  %v868_v6 = vld [vmem:[%s1129_s0 + $0x30] sm:$0xff]   ;;  %v871_v9 = vld [vmem:[%s1129_s0 + $0x28] sm:$0xff]  }
   0x4   :  { %717 = vmatpush3.bf16.msra.mxu0 %v865_v3  ;;  %325 = vmatprep.subr.bf16.mxu1 %v908_v0  ;;  %v872_v10 = vld [vmem:[%s1129_s0 + $0x60] sm:$0xff]   ;;  %v875_v13 = vld [vmem:[%s1129_s0 + $0x58] sm:$0xff]   ;;  %v878_v16 = vld [vmem:[%s1129_s0 + $0x50] sm:$0xff]  }
   0x5   :  { %718 = vmatprep.subr.bf16.mxu0 %v866_v4  ;;  %v873_v11 = vld [vmem:[%s1129_s0 + $0xa0] sm:$0xff]   ;;  %v876_v14 = vld [vmem:[%s1129_s0 + $0x98] sm:$0xff]   ;;  %v879_v17 = vld [vmem:[%s1129_s0 + $0x90] sm:$0xff]  }
   0x6   :  { %v874_v12 = vld [vmem:[%s1129_s0 + $0x20] sm:$0xff]   ;;  %v877_v15 = vld [vmem:[%s1129_s0 + $0x18] sm:$0xff]   ;;  %v880_v18 = vld [vmem:[%s1129_s0 + $0x10] sm:$0xff]  }
   0x7   :  { %326 = vmatpush1.bf16.msra.mxu1 %v867_v5  ;;  %v881_v19 = vld [vmem:[%s1129_s0 + $0x48] sm:$0xff]   ;;  %v884_v22 = vld [vmem:[%s1129_s0 + $0x40] sm:$0xff]   ;;  %v387_v27 = vld [vmem:[%s1131_s4 + $0x78] sm:$0xff] }
   0x8   :  { %719 = vmatpush3.bf16.msra.mxu0 %v868_v6  ;;  %327 = vmatprep.subr.bf16.mxu1 %v908_v0  ;;  %v882_v20 = vld [vmem:[%s1129_s0 + $0x88] sm:$0xff]   ;;  %v889_v23 = vld [vmem:[%s1130_s1 + $0x4] ss:$16 sps:$4 sm:$0xff]   ;;  %v887_v28 = vld [vmem:[%s1130_s1] ss:$16 sps:$4 sm:$0xff]  }
   0x9   :  { %720 = vmatprep.subr.bf16.mxu0 %v869_v7  ;;  %v883_v21 = vld [vmem:[%s1129_s0 + $0x8] sm:$0xff]   ;;  %v885_v24 = vld [vmem:[%s1129_s0 + $0x80] sm:$0xff]   ;;  %306 = vmatprep.mubr.bf16.mxu0 %v889_v23  ;;  %v386_v32 = vld [vmem:[%s1131_s4 + $0x70] sm:$0xff] }
   0xa   :  { %v893_v25 = vld [vmem:[%s1130_s1 + $0xc] ss:$16 sps:$4 sm:$0xff]   ;;  %v886_v26 = vld [vmem:[%s1129_s0] sm:$0xff]   ;;  %v891_v31 = vld [vmem:[%s1130_s1 + $0x8] ss:$16 sps:$4 sm:$0xff]  }
   0xb   :  { %328 = vmatpush1.bf16.msra.mxu1 %v870_v8  ;;  %695 = vmatprep.mubr.msk.bf16.mxu1 %vm267_vm0, %v893_v25  ;;  %v890_v29 = vld [vmem:[%s1129_s0 + $0xc0] sm:$0xff]   ;;  %v897_v33 = vld [vmem:[%s1130_s1 + $0x2c] ss:$16 sps:$4 sm:$0xff]   ;;  %v899_v38 = vld [vmem:[%s1130_s1 + $0x28] ss:$16 sps:$4 sm:$0xff]  }
   0xc   :  { %721 = vmatpush3.bf16.msra.mxu0 %v871_v9  ;;  %329 = vmatprep.subr.bf16.mxu1 %v908_v0  ;;  %v894_v30 = vld [vmem:[%s1130_s1 + $0x24] ss:$16 sps:$4 sm:$0xff]   ;;  %v385_v34 = vld [vmem:[%s1131_s4 + $0x68] sm:$0xff]  ;;  %v896_v36 = vld [vmem:[%s1130_s1 + $0x20] ss:$16 sps:$4 sm:$0xff]  }
   0xd   :  { %722 = vmatprep.subr.bf16.mxu0 %v872_v10  ;;  %v384_v35 = vld [vmem:[%s1131_s4 + $0x60] sm:$0xff]  ;;  %v383_v37 = vld [vmem:[%s1131_s4 + $0x58] sm:$0xff]  ;;  %v382_v39 = vld [vmem:[%s1131_s4 + $0x50] sm:$0xff] }
   0xe   :  { %v381_v40 = vld [vmem:[%s1131_s4 + $0x48] sm:$0xff]  ;;  %v380_v41 = vld [vmem:[%s1131_s4 + $0x40] sm:$0xff]  ;;  %v379_v42 = vld [vmem:[%s1131_s4 + $0x38] sm:$0xff] }
   0xf   :  { %330 = vmatpush1.bf16.msra.mxu1 %v873_v11  ;;  %v378_v43 = vld [vmem:[%s1131_s4 + $0x30] sm:$0xff]  ;;  %v377_v44 = vld [vmem:[%s1131_s4 + $0x28] sm:$0xff]  ;;  %v376_v45 = vld [vmem:[%s1131_s4 + $0x20] sm:$0xff] }
  0x10   :  { %723 = vmatpush3.bf16.msra.mxu0 %v874_v12  ;;  %331 = vmatprep.subr.bf16.mxu1 %v908_v0  ;;  %v375_v46 = vld [vmem:[%s1131_s4 + $0x18] sm:$0xff]  ;;  %v374_v47 = vld [vmem:[%s1131_s4 + $0x10] sm:$0xff]  ;;  %v373_v48 = vld [vmem:[%s1131_s4 + $0x8] sm:$0xff] }
  0x11   :  { %724 = vmatprep.subr.bf16.mxu0 %v875_v13  ;;  %v372_v49 = vld [vmem:[%s1131_s4] sm:$0xff]  ;;  %v483_v10 = vld [vmem:[%s1132_s2 + $0x10] sm:$0xff]  ;;  %v484_v12 = vld [vmem:[%s1132_s2 + $0x18] sm:$0xff] }
  0x12   :  { %v481_v11 = vld [vmem:[%s1132_s2] sm:$0xff]  ;;  %586 = vperm.xlu1 %862, %v483_v10   ;;  %v482_v13 = vld [vmem:[%s1132_s2 + $0x8] sm:$0xff] }
  0x13   :  { %332 = vmatpush1.bf16.msra.mxu1 %v876_v14  ;;  %576 = vperm.xlu0 %861, %v481_v11   ;;  %v603_v14 = vld [vmem:[%s1133_s3 + $0x8] sm:$0xff] }
  0x14   :  { %725 = vmatpush3.bf16.msra.mxu0 %v877_v15  ;;  %333 = vmatprep.subr.bf16.mxu1 %v908_v0  ;;  %v602_v15 = vld [vmem:[%s1133_s3] sm:$0xff] }
  0x15   :  { %726 = vmatprep.subr.bf16.mxu0 %v878_v16  ;;  %v605_v16 = vld [vmem:[%s1133_s3 + $0x18] sm:$0xff] }
  0x16   :  { %591 = vperm.xlu1 %862, %v484_v12  }
  0x17   :  { %334 = vmatpush1.bf16.msra.mxu1 %v879_v17  ;;  %581 = vperm.xlu0 %861, %v482_v13   ;;  %v604_v17 = vld [vmem:[%s1133_s3 + $0x10] sm:$0xff] }
  0x18   :  { %727 = vmatpush3.bf16.msra.mxu0 %v880_v18  ;;  %335 = vmatprep.subr.bf16.mxu1 %v908_v0 }
  0x19   :  { %728 = vmatprep.subr.bf16.mxu0 %v881_v19 }
  0x1a   :  { %613 = vperm.xlu1 %862, %v603_v14  }
  0x1b   :  { %336 = vmatpush1.bf16.msra.mxu1 %v882_v20  ;;  %608 = vperm.xlu0 %861, %v602_v15  }
  0x1c   :  { %729 = vmatpush3.bf16.msra.mxu0 %v883_v21  ;;  %337 = vmatprep.subr.bf16.mxu1 %v908_v0 }
  0x1d   :  { %730 = vmatprep.subr.bf16.mxu0 %v884_v22 }
  0x1e   :  { %623 = vperm.xlu1 %862, %v605_v16  }
  0x1f   :  { %338 = vmatpush1.bf16.msra.mxu1 %v885_v24  ;;  %618 = vperm.xlu0 %861, %v604_v17  }
  0x20   :  { %731 = vmatpush3.bf16.msra.mxu0 %v886_v26  ;;  %353 = vmatprep.subr.bf16.mxu1 %v908_v0 }
  0x21   :  { %784 = vmatprep.subr.mxu0 %v387_v27 }
  0x23   :  { %307 = vmatmul.mubr.bf16.vlgmr.msra.gmra.mxu0 %v887_v28  ;;  %354 = vmatpush2.bf16.msra.mxu1 %v890_v29 }
  0x24   :  { %314 = vmatprep.mubr.bf16.mxu0 %v894_v30  ;;  %785 = vmatpush3.msra.mxu0 %v387_v27 }
  0x25   :  { %786 = vmatprep.subr.mxu0 %v386_v32  ;;  %822 = vmatprep.subr.mxu1 %v387_v27 }
  0x26   :  { %356 = vmatmul.mubr.bf16.vlgmr.msra.gmra.mxu1 %v891_v31  ;;  %787 = vmatpush3.msra.mxu0 %v386_v32 }
  0x27   :  { %696 = vmatprep.mubr.msk.bf16.mxu1 %vm267_vm0, %v897_v33  ;;  %788 = vmatprep.subr.mxu0 %v385_v34 }
  0x28   :  { %789 = vmatpush3.msra.mxu0 %v385_v34  ;;  %823 = vmatpush3.msra.mxu1 %v387_v27 }
  0x29   :  { %790 = vmatprep.subr.mxu0 %v384_v35  ;;  %824 = vmatprep.subr.mxu1 %v386_v32 }
  0x2a   :  { %791 = vmatpush3.msra.mxu0 %v384_v35  ;;  %825 = vmatpush3.msra.mxu1 %v386_v32 }
  0x2b   :  { %315 = vmatmul.mubr.bf16.gmra.mxu0 %v896_v36  ;;  %792 = vmatprep.subr.mxu0 %v383_v37 }
  0x2c   :  { %793 = vmatpush3.msra.mxu0 %v383_v37  ;;  %826 = vmatprep.subr.mxu1 %v385_v34 }
  0x2d   :  { %794 = vmatprep.subr.mxu0 %v382_v39  ;;  %827 = vmatpush3.msra.mxu1 %v385_v34 }
  0x2e   :  { %364 = vmatmul.mubr.bf16.gmra.mxu1 %v899_v38  ;;  %795 = vmatpush3.msra.mxu0 %v382_v39 }
  0x2f   :  { %796 = vmatprep.subr.mxu0 %v381_v40  ;;  %828 = vmatprep.subr.mxu1 %v384_v35 }
  0x30   :  { %797 = vmatpush3.msra.mxu0 %v381_v40  ;;  %829 = vmatpush3.msra.mxu1 %v384_v35 }
  0x31   :  { %798 = vmatprep.subr.mxu0 %v380_v41  ;;  %830 = vmatprep.subr.mxu1 %v383_v37 }
  0x32   :  { %799 = vmatpush3.msra.mxu0 %v380_v41  ;;  %831 = vmatpush3.msra.mxu1 %v383_v37 }
  0x33   :  { %800 = vmatprep.subr.mxu0 %v379_v42  ;;  %832 = vmatprep.subr.mxu1 %v382_v39 }
  0x34   :  { %801 = vmatpush3.msra.mxu0 %v379_v42  ;;  %833 = vmatpush3.msra.mxu1 %v382_v39 }
  0x35   :  { %802 = vmatprep.subr.mxu0 %v378_v43  ;;  %834 = vmatprep.subr.mxu1 %v381_v40 }
  0x36   :  { %803 = vmatpush3.msra.mxu0 %v378_v43  ;;  %835 = vmatpush3.msra.mxu1 %v381_v40 }
  0x37   :  { %804 = vmatprep.subr.mxu0 %v377_v44  ;;  %836 = vmatprep.subr.mxu1 %v380_v41 }
  0x38   :  { %805 = vmatpush3.msra.mxu0 %v377_v44  ;;  %837 = vmatpush3.msra.mxu1 %v380_v41 }
  0x39   :  { %838 = vmatprep.subr.mxu1 %v379_v42  ;;  %806 = vmatprep.subr.mxu0 %v376_v45 }
  0x3a   :  { %839 = vmatpush3.msra.mxu1 %v379_v42  ;;  %807 = vmatpush3.msra.mxu0 %v376_v45 }
  0x3b   :  { %840 = vmatprep.subr.mxu1 %v378_v43  ;;  %808 = vmatprep.subr.mxu0 %v375_v46 }
  0x3c   :  { %841 = vmatpush3.msra.mxu1 %v378_v43  ;;  %809 = vmatpush3.msra.mxu0 %v375_v46 }
  0x3d   :  { %842 = vmatprep.subr.mxu1 %v377_v44  ;;  %810 = vmatprep.subr.mxu0 %v374_v47 }
  0x3e   :  { %843 = vmatpush3.msra.mxu1 %v377_v44  ;;  %811 = vmatpush3.msra.mxu0 %v374_v47 }
  0x3f   :  { %844 = vmatprep.subr.mxu1 %v376_v45  ;;  %812 = vmatprep.subr.mxu0 %v373_v48 }
  0x40   :  { %845 = vmatpush3.msra.mxu1 %v376_v45  ;;  %813 = vmatpush3.msra.mxu0 %v373_v48 }
  0x41   :  { %846 = vmatprep.subr.mxu1 %v375_v46  ;;  %814 = vmatprep.subr.mxu0 %v372_v49 }
  0x42   :  { %847 = vmatpush3.msra.mxu1 %v375_v46  ;;  %815 = vmatpush3.msra.mxu0 %v372_v49 }
  0x43   :  { %848 = vmatprep.subr.mxu1 %v374_v47 }
  0x44   :  { %849 = vmatpush3.msra.mxu1 %v374_v47 }
  0x45   :  { %850 = vmatprep.subr.mxu1 %v373_v48 }
  0x46   :  { %851 = vmatpush3.msra.mxu1 %v373_v48 }
  0x47   :  { %852 = vmatprep.subr.mxu1 %v372_v49 }
  0x48   :  { %853 = vmatpush3.msra.mxu1 %v372_v49 }
  0x8d   :  { %v587_v34 = vpop.permute.xlu1 %586 }
  0x8e   :  { %v577_v37 = vpop.permute.xlu0 %576 }
  0x91   :  { %v592_v40 = vpop.permute.xlu1 %591 }
  0x92   :  { %v582_v42 = vpop.permute.xlu0 %581 }
  0x95   :  { %v614_v47 = vpop.permute.xlu1 %613 }
  0xe3   :  { %v732_v50 = vpop.f32.mrf.mxu0 }
  0xe5   :  { %v733_v51 = vpop.f32.mrf.mxu0 }
  0xe6   :  { %v734_v52 = vadd.f32 %v733_v51, %v732_v50  ;;  %v357_v53 = vpop.f32.mrf.mxu1  ;;  %v609_v50 = vpop.permute.xlu0 %608 }
  0xe7   :  { %v735_v54 = vpop.f32.mrf.mxu0 }
  0xe8   :  { %v358_v55 = vadd.f32 %v734_v52, %v357_v53  ;;  %v359_v56 = vpop.f32.mrf.mxu1 }
  0xe9   :  { %v736_v57 = vpop.f32.mrf.mxu0 }
  0xea   :  { %v737_v58 = vadd.f32 %v736_v57, %v735_v54  ;;  %v360_v59 = vpop.f32.mrf.mxu1  ;;  %816 = vmatprep.mubr.f32.mxu0 %v358_v55 }
  0xeb   :  { %v738_v60 = vpop.f32.mrf.mxu0 }
  0xec   :  { %v361_v61 = vadd.f32 %v737_v58, %v360_v59  ;;  %v362_v62 = vpop.f32.mrf.mxu1 }
  0xed   :  { %v739_v63 = vpop.f32.mrf.mxu0 }
  0xee   :  { %v740_v0 = vadd.f32 %v739_v63, %v738_v60  ;;  %v365_v1 = vpop.f32.mrf.mxu1  ;;  %817 = vmatmul.mubr.f32.vlgmr.msra.gmra.mxu0 %v361_v61 }
  0xef   :  { %v741_v2 = vpop.f32.mrf.mxu0 }
  0xf0   :  { %v366_v3 = vadd.f32 %v740_v0, %v365_v1  ;;  %v367_v4 = vpop.f32.mrf.mxu1  ;;  %v619_v1 = vpop.permute.xlu0 %618 }
  0xf1   :  { %v742_v5 = vpop.f32.mrf.mxu0 }
  0xf2   :  { %v743_v6 = vadd.f32 %v742_v5, %v741_v2  ;;  %v368_v7 = vpop.f32.mrf.mxu1  ;;  %819 = vmatprep.mubr.f32.mxu0 %v366_v3 }
  0xf4   :  { %v369_v8 = vadd.f32 %v743_v6, %v368_v7  ;;  %v370_v9 = vpop.f32.mrf.mxu1 }
  0xf6   :  { %820 = vmatmul.mubr.f32.gmra.mxu0 %v369_v8 }
 0x1ae   :  { %v818_v18 = vpop.f32.mrf.mxu0 }
 0x1af   :  { %v474_v19 = vsub.f32 %v361_v61, %v818_v18  ;;  %v624_v61 = vpop.permute.xlu1 %623 }
 0x1b0   :  { %v454_v20 = vpop.f32.mrf.mxu0 }
 0x1b1   :  { %v473_v21 = vsub.f32 %v358_v55, %v454_v20  ;;  %v478_v23 = vmul.f32 %v474_v19, %v474_v19 }
 0x1b3   :  { %v477_v22 = vmul.f32 %v473_v21, %v473_v21 }
 0x1b5   :  { %854 = vmatprep.mubr.f32.mxu1 %v477_v22 }
 0x1b6   :  { %v821_v24 = vpop.f32.mrf.mxu0  ;;  %855 = vmatmul.mubr.f32.vlgmr.msra.gmra.mxu1 %v478_v23 }
 0x1b7   :  { %v476_v25 = vsub.f32 %v369_v8, %v821_v24 }
 0x1b8   :  { %v464_v26 = vpop.f32.mrf.mxu0 }
 0x1b9   :  { %v475_v27 = vsub.f32 %v366_v3, %v464_v26  ;;  %v480_v29 = vmul.f32 %v476_v25, %v476_v25 }
 0x1bb   :  { %v479_v28 = vmul.f32 %v475_v27, %v475_v27 }
 0x1bd   :  { %857 = vmatprep.mubr.f32.mxu1 %v479_v28 }
 0x1be   :  { %858 = vmatmul.mubr.f32.gmra.mxu1 %v480_v29 }
 0x276   :  { %v856_v30 = vpop.f32.mrf.mxu1 }
 0x277   :  { %v557_v31 = vadd.f32 1e-05, %v856_v30 }
 0x278   :  { %v551_v32 = vpop.f32.mrf.mxu1 }
 0x279   :  { %900 = vrsqrt.f32 %v557_v31  ;;  %v552_v33 = vadd.f32 1e-05, %v551_v32 }
 0x27b   :  { %902 = vrsqrt.f32 %v552_v33 }
 0x27e   :  { %v859_v35 = vpop.f32.mrf.mxu1 }
 0x27f   :  { %v567_v36 = vadd.f32 1e-05, %v859_v35 }
 0x280   :  { %v561_v38 = vpop.f32.mrf.mxu1 }
 0x281   :  { %904 = vrsqrt.f32 %v567_v36  ;;  %v562_v39 = vadd.f32 1e-05, %v561_v38 }
 0x283   :  { %906 = vrsqrt.f32 %v562_v39 }
 0x286   :  { %v901_v41 = vpop.eup %900 }
 0x287   :  { %v595_v43 = vmul.f32 %v901_v41, %v582_v42 }
 0x288   :  { %v903_v44 = vpop.eup %902 }
 0x289   :  { %v594_v45 = vmul.f32 %v903_v44, %v577_v37  ;;  %v599_v46 = vmul.f32 %v595_v43, %v474_v19 }
 0x28b   :  { %v627_v48 = vadd.f32 %v614_v47, %v599_v46  ;;  %v598_v49 = vmul.f32 %v594_v45, %v473_v21 }
 0x28d   :  { %v631_v51 = vmul.f32 0.2, %v627_v48  ;;  %v626_v52 = vadd.f32 %v609_v50, %v598_v49 }
 0x28e   :  { %v905_v53 = vpop.eup %904 }
 0x28f   :  { %v597_v54 = vmul.f32 %v905_v53, %v592_v40  ;;  %v630_v55 = vmul.f32 0.2, %v626_v52  ;;  %v635_v57 = vmax.f32 %v627_v48, %v631_v51 }
 0x290   :  { %v907_v56 = vpop.eup %906 }
 0x291   :  { %v634_v58 = vmax.f32 %v626_v52, %v630_v55  ;;  %v601_v59 = vmul.f32 %v597_v54, %v476_v25  ;;  %v596_v60 = vmul.f32 %v907_v56, %v587_v34 }
 0x293   :  { %v708_v62 = vpack.c.bf16 %v635_v57, %v634_v58  ;;  %v629_v63 = vadd.f32 %v624_v61, %v601_v59  ;;  %v600_v0 = vmul.f32 %v596_v60, %v475_v27 }
 0x295   :  { %709 = vst [vmem:[%s1134_s5] sm:$0xff] %v708_v62   ;;  %v633_v2 = vmul.f32 0.2, %v629_v63  ;;  %v628_v3 = vadd.f32 %v619_v1, %v600_v0 }
 0x297   :  { %v632_v4 = vmul.f32 0.2, %v628_v3  ;;  %v637_v5 = vmax.f32 %v629_v63, %v633_v2 }
 0x299   :  { %v636_v6 = vmax.f32 %v628_v3, %v632_v4 }
 0x29b   :  { %v713_v7 = vpack.c.bf16 %v637_v5, %v636_v6 }
 0x29d   :  { %715 = vst [vmem:[%s1134_s5 + $0x8] sm:$0xff] %v713_v7  }

// kernel: dgwgan_forward.7
= control target key start
LH: loop header
LB: loop body
LE: loop exit
PB: predicated region body
PF: predicated region fallthrough
CT: control target
= control target key end

     0   :  { %s2389_s0 = inlined_call_operand.vmem [shape: bf16[1,800,32], index: 0, kind: input, shape index: {}]   ;;  %s2390_s1 = inlined_call_operand.vmem [shape: bf16[64,800], index: 1, kind: input, shape index: {}]   ;;  %s2391_s2 = inlined_call_operand.vmem [shape: f32[64,1], index: 2, kind: input, shape index: {}]   ;;  %s2392_s3 = inlined_call_operand.vmem [shape: f32[64,1], index: 3, kind: input, shape index: {}]   ;;  %s2393_s4 = inlined_call_operand.vmem [shape: f32[32,32], index: 4, kind: input, shape index: {}]   ;;  %s2394_s5 = inlined_call_operand.vmem [shape: f32[64,32], index: 5, kind: input, shape index: {}]   ;;  %s2395_s6 = inlined_call_operand.vmem [shape: f32[32,2], index: 6, kind: input, shape index: {}]   ;;  %s2396_s7 = inlined_call_operand.<no memory space> [shape: f32[1,1], index: 7, kind: input, shape index: {}]   ;;  %s2397_s8 = inlined_call_operand.hbm [shape: f32[1,1,2], index: 8, kind: output, shape index: {}]  }
   0x1   :  { %v13_v0 = vstv %s2396_s7 }
   0x2   :  { %14 = vst [vmem:[#allocation2] sm:$0x1] %v13_v0 }
   0x3   :  { %v1763_v1 = vld [vmem:[%s2389_s0 + $0x78] sm:$0xff]   ;;  %v1767_v5 = vld [vmem:[%s2389_s0 + $0x70] sm:$0xff]   ;;  %v1771_v9 = vld [vmem:[%s2389_s0 + $0x68] sm:$0xff]   ;;  %vm605_vm0 = vcmask 261120  }
   0x4   :  { %v1764_v2 = vld [vmem:[%s2389_s0 + $0xf8] sm:$0xff]   ;;  %1539 = vmatprep.subr.bf16.mxu0 %v1763_v1  ;;  %v1768_v6 = vld [vmem:[%s2389_s0 + $0xf0] sm:$0xff]   ;;  %v1772_v10 = vld [vmem:[%s2389_s0 + $0xe8] sm:$0xff]  }
   0x5   :  { %v1765_v3 = vld [vmem:[%s2389_s0 + $0x38] sm:$0xff]   ;;  %1579 = vmatprep.subr.bf16.mxu1 %v1764_v2  ;;  %v1769_v7 = vld [vmem:[%s2389_s0 + $0x30] sm:$0xff]   ;;  %v1773_v11 = vld [vmem:[%s2389_s0 + $0x28] sm:$0xff]  }
   0x6   :  { %v1766_v4 = vld [vmem:[%s2389_s0 + $0xb8] sm:$0xff]   ;;  %1540 = vmatpush3.bf16.msra.mxu0 %v1765_v3  ;;  %v1770_v8 = vld [vmem:[%s2389_s0 + $0xb0] sm:$0xff]   ;;  %v1774_v12 = vld [vmem:[%s2389_s0 + $0xa8] sm:$0xff]  }
   0x7   :  { %1580 = vmatpush3.bf16.msra.mxu1 %v1766_v4  ;;  %1541 = vmatprep.subr.bf16.mxu0 %v1767_v5  ;;  %v1775_v13 = vld [vmem:[%s2389_s0 + $0x60] sm:$0xff]   ;;  %v1779_v17 = vld [vmem:[%s2389_s0 + $0x58] sm:$0xff]   ;;  %v1783_v21 = vld [vmem:[%s2389_s0 + $0x50] sm:$0xff]  }
   0x8   :  { %1581 = vmatprep.subr.bf16.mxu1 %v1768_v6  ;;  %v1776_v14 = vld [vmem:[%s2389_s0 + $0xe0] sm:$0xff]   ;;  %v1780_v18 = vld [vmem:[%s2389_s0 + $0xd8] sm:$0xff]   ;;  %v1784_v22 = vld [vmem:[%s2389_s0 + $0xd0] sm:$0xff]  }
   0x9   :  { %v1777_v15 = vld [vmem:[%s2389_s0 + $0x20] sm:$0xff]   ;;  %v1781_v19 = vld [vmem:[%s2389_s0 + $0x18] sm:$0xff]   ;;  %v1785_v23 = vld [vmem:[%s2389_s0 + $0x10] sm:$0xff]  }
   0xa   :  { %1542 = vmatpush3.bf16.msra.mxu0 %v1769_v7  ;;  %v1778_v16 = vld [vmem:[%s2389_s0 + $0xa0] sm:$0xff]   ;;  %v1782_v20 = vld [vmem:[%s2389_s0 + $0x98] sm:$0xff]   ;;  %v1786_v24 = vld [vmem:[%s2389_s0 + $0x90] sm:$0xff]  }
   0xb   :  { %1582 = vmatpush3.bf16.msra.mxu1 %v1770_v8  ;;  %1543 = vmatprep.subr.bf16.mxu0 %v1771_v9  ;;  %v1787_v25 = vld [vmem:[%s2389_s0 + $0x48] sm:$0xff]   ;;  %v1791_v29 = vld [vmem:[%s2389_s0 + $0x40] sm:$0xff]   ;;  %v1801_v37 = vld [vmem:[%s2389_s0 + $0x178] sm:$0xff]  }
   0xc   :  { %1583 = vmatprep.subr.bf16.mxu1 %v1772_v10  ;;  %v1788_v26 = vld [vmem:[%s2389_s0 + $0xc8] sm:$0xff]   ;;  %v1792_v30 = vld [vmem:[%s2389_s0 + $0xc0] sm:$0xff]   ;;  %v1802_v38 = vld [vmem:[%s2389_s0 + $0x138] sm:$0xff]  }
   0xd   :  { %v1789_v27 = vld [vmem:[%s2389_s0 + $0x8] sm:$0xff]   ;;  %v1793_v31 = vld [vmem:[%s2389_s0] sm:$0xff]   ;;  %v1803_v39 = vld [vmem:[%s2389_s0 + $0x170] sm:$0xff]  }
   0xe   :  { %1544 = vmatpush3.bf16.msra.mxu0 %v1773_v11  ;;  %v1790_v28 = vld [vmem:[%s2389_s0 + $0x88] sm:$0xff]   ;;  %v1794_v32 = vld [vmem:[%s2389_s0 + $0x80] sm:$0xff]   ;;  %v1804_v40 = vld [vmem:[%s2389_s0 + $0x130] sm:$0xff]  }
   0xf   :  { %1584 = vmatpush3.bf16.msra.mxu1 %v1774_v12  ;;  %1545 = vmatprep.subr.bf16.mxu0 %v1775_v13  ;;  %v1795_v33 = vld [vmem:[%s2390_s1] ss:$28 sps:$4 sm:$0xff]   ;;  %v1798_v35 = vld [vmem:[%s2390_s1 + $0x8] ss:$28 sps:$4 sm:$0xff]   ;;  %v1809_v43 = vld [vmem:[%s2390_s1 + $0x38] ss:$28 sps:$4 sm:$0xff]  }
  0x10   :  { %1585 = vmatprep.subr.bf16.mxu1 %v1776_v14  ;;  %v1797_v34 = vld [vmem:[%s2390_s1 + $0x4] ss:$28 sps:$4 sm:$0xff]   ;;  %v1800_v36 = vld [vmem:[%s2390_s1 + $0xc] ss:$28 sps:$4 sm:$0xff]   ;;  %v1805_v41 = vld [vmem:[%s2390_s1 + $0x3c] ss:$28 sps:$4 sm:$0xff]  }
  0x11   :  { %650 = vmatprep.mubr.bf16.mxu0 %v1797_v34  ;;  %715 = vmatprep.mubr.bf16.mxu1 %v1800_v36  ;;  %v1807_v42 = vld [vmem:[%s2390_s1 + $0x44] ss:$28 sps:$4 sm:$0xff]   ;;  %v1811_v45 = vld [vmem:[%s2389_s0 + $0x168] sm:$0xff]   ;;  %v1815_v49 = vld [vmem:[%s2390_s1 + $0x74] ss:$28 sps:$4 sm:$0xff]  }
  0x12   :  { %1546 = vmatpush3.bf16.msra.mxu0 %v1777_v15  ;;  %v1810_v44 = vld [vmem:[%s2390_s1 + $0x40] ss:$28 sps:$4 sm:$0xff]   ;;  %v1812_v46 = vld [vmem:[%s2389_s0 + $0x128] sm:$0xff]   ;;  %v1820_v52 = vld [vmem:[%s2390_s1 + $0x78] ss:$28 sps:$4 sm:$0xff]  }
  0x13   :  { %1586 = vmatpush3.bf16.msra.mxu1 %v1778_v16  ;;  %1547 = vmatprep.subr.bf16.mxu0 %v1779_v17  ;;  %v1813_v47 = vld [vmem:[%s2389_s0 + $0x160] sm:$0xff]   ;;  %v1817_v50 = vld [vmem:[%s2390_s1 + $0x7c] ss:$28 sps:$4 sm:$0xff]   ;;  %v1819_v51 = vld [vmem:[%s2390_s1 + $0x70] ss:$28 sps:$4 sm:$0xff]  }
  0x14   :  { %1587 = vmatprep.subr.bf16.mxu1 %v1780_v18  ;;  %v1814_v48 = vld [vmem:[%s2389_s0 + $0x120] sm:$0xff]   ;;  %v1821_v53 = vld [vmem:[%s2389_s0 + $0x158] sm:$0xff]   ;;  %v1822_v54 = vld [vmem:[%s2389_s0 + $0x188] sm:$0xff]  }
  0x15   :  { %v1823_v55 = vld [vmem:[%s2389_s0 + $0x118] sm:$0xff]   ;;  %v1824_v56 = vld [vmem:[%s2389_s0 + $0x150] sm:$0xff]   ;;  %v1826_v58 = vld [vmem:[%s2390_s1 + $0xac] ss:$28 sps:$4 sm:$0xff]  }
  0x16   :  { %1548 = vmatpush3.bf16.msra.mxu0 %v1781_v19  ;;  %v1825_v57 = vld [vmem:[%s2389_s0 + $0x110] sm:$0xff]   ;;  %v1830_v60 = vld [vmem:[%s2390_s1 + $0xa8] ss:$28 sps:$4 sm:$0xff]  }
  0x17   :  { %1588 = vmatpush3.bf16.msra.mxu1 %v1782_v20  ;;  %1549 = vmatprep.subr.bf16.mxu0 %v1783_v21  ;;  %v1828_v59 = vld [vmem:[%s2390_s1 + $0xb4] ss:$28 sps:$4 sm:$0xff]   ;;  %v1832_v61 = vld [vmem:[%s2389_s0 + $0x148] sm:$0xff]   ;;  %v1834_v0 = vld [vmem:[%s2389_s0 + $0x140] sm:$0xff]  }
  0x18   :  { %1589 = vmatprep.subr.bf16.mxu1 %v1784_v22  ;;  %v1831_v62 = vld [vmem:[%s2390_s1 + $0xb0] ss:$28 sps:$4 sm:$0xff]   ;;  %v1835_v1 = vld [vmem:[%s2389_s0 + $0x100] sm:$0xff]   ;;  %v1840_v4 = vld [vmem:[%s2390_s1 + $0x18] ss:$28 sps:$4 sm:$0xff]  }
  0x19   :  { %v1833_v63 = vld [vmem:[%s2389_s0 + $0x108] sm:$0xff]   ;;  %v1838_v2 = vld [vmem:[%s2390_s1 + $0x14] ss:$28 sps:$4 sm:$0xff]   ;;  %v1839_v3 = vld [vmem:[%s2389_s0 + $0x180] sm:$0xff]  }
  0x1a   :  { %1550 = vmatpush3.bf16.msra.mxu0 %v1785_v23  ;;  %v1836_v5 = vld [vmem:[%s2390_s1 + $0x10] ss:$28 sps:$4 sm:$0xff]   ;;  %v1848_v8 = vld [vmem:[%s2390_s1 + $0x88] ss:$28 sps:$4 sm:$0xff]  }
  0x1b   :  { %1590 = vmatpush3.bf16.msra.mxu1 %v1786_v24  ;;  %1551 = vmatprep.subr.bf16.mxu0 %v1787_v25  ;;  %v1841_v6 = vld [vmem:[%s2390_s1 + $0x50] ss:$28 sps:$4 sm:$0xff]  }
  0x1c   :  { %1591 = vmatprep.subr.bf16.mxu1 %v1788_v26  ;;  %v1842_v7 = vld [vmem:[%s2390_s1 + $0x4c] ss:$28 sps:$4 sm:$0xff]  }
  0x1e   :  { %1552 = vmatpush3.bf16.msra.mxu0 %v1789_v27 }
  0x1f   :  { %1592 = vmatpush3.bf16.msra.mxu1 %v1790_v28  ;;  %1553 = vmatprep.subr.bf16.mxu0 %v1791_v29 }
  0x20   :  { %1593 = vmatprep.subr.bf16.mxu1 %v1792_v30 }
  0x22   :  { %1554 = vmatpush3.bf16.msra.mxu0 %v1793_v31 }
  0x23   :  { %1594 = vmatpush3.bf16.msra.mxu1 %v1794_v32  ;;  %1619 = vmatprep.subr.bf16.mxu0 %v1801_v37 }
  0x24   :  { %1694 = vmatprep.subr.bf16.mxu1 %v1822_v54 }
  0x25   :  { %651 = vmatmul.mubr.bf16.vlgmr.msra.gmra.mxu0 %v1795_v33 }
  0x26   :  { %716 = vmatmul.mubr.bf16.vlgmr.msra.gmra.mxu1 %v1798_v35  ;;  %1620 = vmatpush3.bf16.msra.mxu0 %v1802_v38 }
  0x27   :  { %1621 = vmatprep.subr.bf16.mxu0 %v1803_v39  ;;  %658 = vmatprep.mubr.bf16.mxu0 %v1805_v41 }
  0x28   :  { %723 = vmatprep.mubr.bf16.mxu1 %v1807_v42  ;;  %1695 = vmatpush3.bf16.msra.mxu1 %v1822_v54 }
  0x29   :  { %1696 = vmatprep.subr.bf16.mxu1 %v1839_v3 }
  0x2a   :  { %1622 = vmatpush3.bf16.msra.mxu0 %v1804_v40 }
  0x2b   :  { %1623 = vmatprep.subr.bf16.mxu0 %v1811_v45 }
  0x2c   :  { %1697 = vmatpush3.bf16.msra.mxu1 %v1839_v3 }
  0x2d   :  { %659 = vmatmul.mubr.bf16.gmra.mxu0 %v1809_v43 }
  0x2e   :  { %724 = vmatmul.mubr.bf16.gmra.mxu1 %v1810_v44  ;;  %1624 = vmatpush3.bf16.msra.mxu0 %v1812_v46 }
  0x2f   :  { %1625 = vmatprep.subr.bf16.mxu0 %v1813_v47  ;;  %666 = vmatprep.mubr.bf16.mxu0 %v1815_v49 }
  0x30   :  { %731 = vmatprep.mubr.bf16.mxu1 %v1817_v50 }
  0x32   :  { %1626 = vmatpush3.bf16.msra.mxu0 %v1814_v48 }
  0x33   :  { %1627 = vmatprep.subr.bf16.mxu0 %v1821_v53 }
  0x35   :  { %667 = vmatmul.mubr.bf16.gmra.mxu0 %v1819_v51 }
  0x36   :  { %732 = vmatmul.mubr.bf16.gmra.mxu1 %v1820_v52  ;;  %1628 = vmatpush3.bf16.msra.mxu0 %v1823_v55 }
  0x37   :  { %1629 = vmatprep.subr.bf16.mxu0 %v1824_v56  ;;  %674 = vmatprep.mubr.bf16.mxu0 %v1826_v58 }
  0x38   :  { %739 = vmatprep.mubr.bf16.mxu1 %v1828_v59 }
  0x3a   :  { %1630 = vmatpush3.bf16.msra.mxu0 %v1825_v57 }
  0x3b   :  { %1631 = vmatprep.subr.bf16.mxu0 %v1832_v61 }
  0x3d   :  { %675 = vmatmul.mubr.bf16.gmra.mxu0 %v1830_v60 }
  0x3e   :  { %740 = vmatmul.mubr.bf16.gmra.mxu1 %v1831_v62  ;;  %1632 = vmatpush3.bf16.msra.mxu0 %v1833_v63 }
  0x3f   :  { %780 = vmatprep.mubr.bf16.mxu0 %v1838_v2  ;;  %1633 = vmatprep.subr.bf16.mxu0 %v1834_v0 }
  0x40   :  { %1698 = vmatprep.mubr.msk.bf16.mxu1 %vm605_vm0, %v1840_v4 }
  0x42   :  { %1634 = vmatpush3.bf16.msra.mxu0 %v1835_v1 }
  0x45   :  { %781 = vmatmul.mubr.bf16.vlgmr.msra.gmra.mxu0 %v1836_v5 }
  0x46   :  { %1699 = vmatmul.mubr.msk.bf16.vlgmr.msra.gmra.mxu1 %vm605_vm0, %v1841_v6  ;;  %788 = vmatprep.mubr.bf16.mxu0 %v1842_v7 }
  0x47   :  { %1702 = vmatprep.mubr.msk.bf16.mxu1 %vm605_vm0, %v1848_v8 }
  0x48   :  { %15 = vsyncpa [#allocation4], 0  ;;  %v1844_v9 = vld [vmem:[%s2390_s1 + $0x48] ss:$28 sps:$4 sm:$0xff]   ;;  %v1849_v10 = vld [vmem:[%s2390_s1 + $0xc0] ss:$28 sps:$4 sm:$0xff]  }
  0x49   :  { %v1845_v11 = vld [vmem:[%s2390_s1 + $0x84] ss:$28 sps:$4 sm:$0xff]   ;;  %v1850_v13 = vld [vmem:[%s2390_s1 + $0xbc] ss:$28 sps:$4 sm:$0xff]   ;;  %v880_v16 = vld [vmem:[%s2393_s4 + $0x10] sm:$0xff]  ;;  %vm1893_vm1 = vmmov 0  }
  0x4a   :  { %v1847_v12 = vld [vmem:[%s2390_s1 + $0x80] ss:$28 sps:$4 sm:$0xff]   ;;  %v1852_v14 = vld [vmem:[%s2390_s1 + $0xb8] ss:$28 sps:$4 sm:$0xff]   ;;  %v879_v17 = vld [vmem:[%s2393_s4 + $0x8] sm:$0xff]  ;;  %vm1424_vm2 = vcmask 8192  }
  0x4b   :  { %v881_v15 = vld [vmem:[%s2393_s4 + $0x18] sm:$0xff]  ;;  %v878_v18 = vld [vmem:[%s2393_s4] sm:$0xff] }
  0x4c   :  { %1706 = vmatprep.subr.mxu1 %v881_v15  ;;  %1726 = vmatprep.subr.mxu0 %v881_v15 }
  0x4d   :  { %789 = vmatmul.mubr.bf16.gmra.mxu0 %v1844_v9  ;;  %1707 = vmatpush3.msra.mxu1 %v881_v15 }
  0x4e   :  { %1703 = vmatmul.mubr.msk.bf16.gmra.mxu1 %vm605_vm0, %v1849_v10  ;;  %796 = vmatprep.mubr.bf16.mxu0 %v1845_v11 }
  0x4f   :  { %1727 = vmatpush3.msra.mxu0 %v881_v15  ;;  %1708 = vmatprep.subr.mxu1 %v880_v16 }
  0x50   :  { %1728 = vmatprep.subr.mxu0 %v880_v16  ;;  %1709 = vmatpush3.msra.mxu1 %v880_v16 }
  0x51   :  { %1729 = vmatpush3.msra.mxu0 %v880_v16  ;;  %1710 = vmatprep.subr.mxu1 %v879_v17 }
  0x52   :  { %1730 = vmatprep.subr.mxu0 %v879_v17  ;;  %1711 = vmatpush3.msra.mxu1 %v879_v17 }
  0x53   :  { %1731 = vmatpush3.msra.mxu0 %v879_v17  ;;  %1712 = vmatprep.subr.mxu1 %v878_v18 }
  0x54   :  { %1732 = vmatprep.subr.mxu0 %v878_v18  ;;  %1713 = vmatpush3.msra.mxu1 %v878_v18 }
  0x55   :  { %797 = vmatmul.mubr.bf16.gmra.mxu0 %v1847_v12 }
  0x56   :  { %804 = vmatprep.mubr.bf16.mxu0 %v1850_v13  ;;  %1733 = vmatpush3.msra.mxu0 %v878_v18 }
  0x5d   :  { %805 = vmatmul.mubr.bf16.gmra.mxu0 %v1852_v14 }
  0xe5   :  { %v1555_v19 = vpop.f32.mrf.mxu0 }
  0xe6   :  { %v1595_v20 = vpop.f32.mrf.mxu1 }
  0xe7   :  { %v1556_v21 = vpop.f32.mrf.mxu0 }
  0xe8   :  { %v1596_v22 = vpop.f32.mrf.mxu1  ;;  %v1557_v51 = vadd.f32 %v1556_v21, %v1555_v19 }
  0xe9   :  { %v1558_v23 = vpop.f32.mrf.mxu0  ;;  %v1597_v52 = vadd.f32 %v1596_v22, %v1595_v20 }
  0xea   :  { %v1598_v24 = vpop.f32.mrf.mxu1 }
  0xeb   :  { %v1559_v25 = vpop.f32.mrf.mxu0  ;;  %v718_v57 = vadd.f32 %v1597_v52, %v1557_v51 }
  0xec   :  { %v1599_v26 = vpop.f32.mrf.mxu1  ;;  %v1560_v58 = vadd.f32 %v1559_v25, %v1558_v23 }
  0xed   :  { %v1561_v27 = vpop.f32.mrf.mxu0  ;;  %v1600_v59 = vadd.f32 %v1599_v26, %v1598_v24 }
  0xee   :  { %v1601_v28 = vpop.f32.mrf.mxu1 }
  0xef   :  { %v1562_v29 = vpop.f32.mrf.mxu0  ;;  %v721_v3 = vadd.f32 %v1600_v59, %v1560_v58 }
  0xf0   :  { %v1602_v30 = vpop.f32.mrf.mxu1  ;;  %v1563_v0 = vadd.f32 %v1562_v29, %v1561_v27 }
  0xf1   :  { %v1564_v31 = vpop.f32.mrf.mxu0  ;;  %v1603_v1 = vadd.f32 %v1602_v30, %v1601_v28 }
  0xf2   :  { %v1604_v32 = vpop.f32.mrf.mxu1 }
  0xf3   :  { %v1565_v33 = vpop.f32.mrf.mxu0  ;;  %v726_v9 = vadd.f32 %v1603_v1, %v1563_v0  ;;  %v1228_v0 = vld [vmem:[%s2392_s3] sm:$0xff]  ;;  %v1229_v1 = vld [vmem:[%s2392_s3 + $0x8] sm:$0xff] }
  0xf4   :  { %v1605_v34 = vpop.f32.mrf.mxu1  ;;  %v1566_v11 = vadd.f32 %v1565_v33, %v1564_v31 }
  0xf5   :  { %v1567_v35 = vpop.f32.mrf.mxu0  ;;  %v1606_v12 = vadd.f32 %v1605_v34, %v1604_v32 }
  0xf6   :  { %v1607_v36 = vpop.f32.mrf.mxu1 }
  0xf7   :  { %v1568_v37 = vpop.f32.mrf.mxu0  ;;  %v729_v21 = vadd.f32 %v1606_v12, %v1566_v11  ;;  %v1234_v11 = vld [vmem:[%s2392_s3 + $0x30] sm:$0xff]  ;;  %v1235_v12 = vld [vmem:[%s2392_s3 + $0x38] sm:$0xff] }
  0xf8   :  { %v1608_v38 = vpop.f32.mrf.mxu1  ;;  %v1569_v17 = vadd.f32 %v1568_v37, %v1567_v35 }
  0xf9   :  { %v1570_v39 = vpop.f32.mrf.mxu0  ;;  %v1609_v18 = vadd.f32 %v1608_v38, %v1607_v36 }
  0xfa   :  { %v1610_v40 = vpop.f32.mrf.mxu1 }
  0xfb   :  { %v1571_v41 = vpop.f32.mrf.mxu0  ;;  %v734_v26 = vadd.f32 %v1609_v18, %v1569_v17 }
  0xfc   :  { %v1611_v42 = vpop.f32.mrf.mxu1  ;;  %v1572_v29 = vadd.f32 %v1571_v41, %v1570_v39 }
  0xfd   :  { %v1573_v43 = vpop.f32.mrf.mxu0  ;;  %v1612_v30 = vadd.f32 %v1611_v42, %v1610_v40 }
  0xfe   :  { %v1613_v44 = vpop.f32.mrf.mxu1 }
  0xff   :  { %v1574_v45 = vpop.f32.mrf.mxu0  ;;  %v737_v51 = vadd.f32 %v1612_v30, %v1572_v29 }
 0x100   :  { %v1614_v46 = vpop.f32.mrf.mxu1  ;;  %v1575_v35 = vadd.f32 %v1574_v45, %v1573_v43 }
 0x101   :  { %v2193_v47 = vpop.f32.mrf.mxu0  ;;  %v1615_v36 = vadd.f32 %v1614_v46, %v1613_v44 }
 0x102   :  { %v2195_v48 = vpop.f32.mrf.mxu1 }
 0x103   :  { %v2197_v49 = vpop.f32.mrf.mxu0  ;;  %v742_v39 = vadd.f32 %v1615_v36, %v1575_v35 }
 0x104   :  { %v2199_v50 = vpop.f32.mrf.mxu1  ;;  %v1578_v42 = vadd.f32 %v2197_v49, %v2193_v47  ;;  %v1029_v49 = vld [vmem:[%s2391_s2 + $0x10] sm:$0xff] }
 0x105   :  { %v1635_v53 = vpop.f32.mrf.mxu0  ;;  %v1618_v43 = vadd.f32 %v2199_v50, %v2195_v48  ;;  %v1027_v48 = vld [vmem:[%s2391_s2] sm:$0xff]  ;;  %v1891_v50 = vmov 0  }
 0x106   :  { %v1700_v54 = vpop.f32.mrf.mxu1  ;;  %1761 = vset.pattern.permute.xlu0 %v1891_v50  ;;  %1762 = vset.pattern.permute.xlu1 %v1891_v50 }
 0x107   :  { %v1636_v55 = vpop.f32.mrf.mxu0  ;;  %v745_v58 = vadd.f32 %v1618_v43, %v1578_v42  ;;  %1174 = vperm.xlu0 %1761, %v1027_v48   ;;  %1184 = vperm.xlu1 %1762, %v1029_v49  }
 0x108   :  { %v847_v56 = vpop.f32.mrf.mxu1  ;;  %v1637_v60 = vadd.f32 %v1636_v55, %v1635_v53 }
 0x109   :  { %v1638_v61 = vpop.f32.mrf.mxu0 }
 0x10a   :  { %v1701_v62 = vpop.f32.mrf.mxu1  ;;  %v783_v63 = vadd.f32 %v1637_v60, %v718_v57 }
 0x10b   :  { %v1639_v2 = vpop.f32.mrf.mxu0 }
 0x10c   :  { %v1640_v4 = vadd.f32 %v1639_v2, %v1638_v61  ;;  %v2201_v5 = vadd.f32 %v847_v56, %v783_v63  ;;  %v850_v7 = vpop.f32.mrf.mxu1  ;;  %v1030_v63 = vld [vmem:[%s2391_s2 + $0x18] sm:$0xff]  ;;  %v1031_v2 = vld [vmem:[%s2391_s2 + $0x20] sm:$0xff] }
 0x10d   :  { %v1641_v6 = vpop.f32.mrf.mxu0  ;;  %1189 = vperm.xlu1 %1762, %v1030_v63  }
 0x10e   :  { %1714 = vmatprep.mubr.msk.f32.mxu1 %vm605_vm0, %v2201_v5  ;;  %v786_v8 = vadd.f32 %v1640_v4, %v721_v3  ;;  %v1704_v20 = vpop.f32.mrf.mxu1  ;;  %v1230_v3 = vld [vmem:[%s2392_s3 + $0x10] sm:$0xff]  ;;  %v1032_v4 = vld [vmem:[%s2391_s2 + $0x28] sm:$0xff] }
 0x10f   :  { %v1642_v10 = vpop.f32.mrf.mxu0 }
 0x110   :  { %v1643_v13 = vadd.f32 %v1642_v10, %v1641_v6  ;;  %v2205_v14 = vadd.f32 %v850_v7, %v786_v8  ;;  %v863_v28 = vpop.f32.mrf.mxu1  ;;  %v1231_v6 = vld [vmem:[%s2392_s3 + $0x18] sm:$0xff]  ;;  %v1033_v7 = vld [vmem:[%s2391_s2 + $0x30] sm:$0xff]  ;;  %v1232_v8 = vld [vmem:[%s2392_s3 + $0x20] sm:$0xff] }
 0x111   :  { %v1644_v15 = vpop.f32.mrf.mxu0  ;;  %1243 = vperm.xlu1 %1762, %v1229_v1   ;;  %v1233_v10 = vld [vmem:[%s2392_s3 + $0x28] sm:$0xff] }
 0x112   :  { %v791_v16 = vadd.f32 %v1643_v13, %v726_v9  ;;  %1715 = vmatmul.mubr.msk.f32.vlgmr.msra.gmra.mxu1 %vm605_vm0, %v2205_v14  ;;  %v1705_v38 = vpop.f32.mrf.mxu1  ;;  %v1034_v9 = vld [vmem:[%s2391_s2 + $0x38] sm:$0xff]  ;;  %v1341_v13 = vld [vmem:[#allocation2] sm:$0x1] }
 0x113   :  { %v1645_v19 = vpop.f32.mrf.mxu0 }
 0x114   :  { %v2209_v22 = vadd.f32 %v1700_v54, %v791_v16  ;;  %v1646_v23 = vadd.f32 %v1645_v19, %v1644_v15  ;;  %v866_v40 = vpop.f32.mrf.mxu1 }
 0x115   :  { %v1647_v24 = vpop.f32.mrf.mxu0  ;;  %1248 = vperm.xlu1 %1762, %v1230_v3  }
 0x116   :  { %v794_v25 = vadd.f32 %v1646_v23, %v729_v21  ;;  %1717 = vmatprep.mubr.msk.f32.mxu1 %vm605_vm0, %v2209_v22 }
 0x117   :  { %v1648_v27 = vpop.f32.mrf.mxu0 }
 0x118   :  { %v2213_v31 = vadd.f32 %v1701_v62, %v794_v25  ;;  %v1649_v32 = vadd.f32 %v1648_v27, %v1647_v24  ;;  %v1028_v62 = vld [vmem:[%s2391_s2 + $0x8] sm:$0xff] }
 0x119   :  { %v1650_v33 = vpop.f32.mrf.mxu0  ;;  %1179 = vperm.xlu0 %1761, %v1028_v62   ;;  %1253 = vperm.xlu1 %1762, %v1231_v6  }
 0x11a   :  { %v799_v34 = vadd.f32 %v1649_v32, %v734_v26  ;;  %1718 = vmatmul.mubr.msk.f32.gmra.mxu1 %vm605_vm0, %v2213_v31 }
 0x11b   :  { %v1651_v37 = vpop.f32.mrf.mxu0 }
 0x11c   :  { %v2217_v52 = vadd.f32 %v863_v28, %v799_v34  ;;  %v1652_v53 = vadd.f32 %v1651_v37, %v1650_v33  ;;  %v1340_v37 = vld [vmem:[%s2395_s6 + $0x18] sm:$0xff] }
 0x11d   :  { %v1653_v54 = vpop.f32.mrf.mxu0  ;;  %1238 = vperm.xlu0 %1761, %v1228_v0   ;;  %1258 = vperm.xlu1 %1762, %v1232_v8  }
 0x11e   :  { %v802_v55 = vadd.f32 %v1652_v53, %v737_v51  ;;  %1720 = vmatprep.mubr.msk.f32.mxu1 %vm605_vm0, %v2217_v52  ;;  %v1339_v51 = vld [vmem:[%s2395_s6 + $0x10] sm:$0xff]  ;;  %v1337_v53 = vld [vmem:[%s2395_s6] sm:$0xff] }
 0x11f   :  { %v1654_v41 = vpop.f32.mrf.mxu0 }
 0x120   :  { %v2225_v44 = vadd.f32 %v866_v40, %v802_v55  ;;  %v1655_v45 = vadd.f32 %v1654_v41, %v1653_v54 }
 0x121   :  { %v1656_v46 = vpop.f32.mrf.mxu0  ;;  %1194 = vperm.xlu0 %1761, %v1031_v2   ;;  %1263 = vperm.xlu1 %1762, %v1233_v10  }
 0x122   :  { %v807_v56 = vadd.f32 %v1655_v45, %v742_v39  ;;  %1721 = vmatmul.mubr.msk.f32.gmra.mxu1 %vm605_vm0, %v2225_v44 }
 0x123   :  { %v1657_v57 = vpop.f32.mrf.mxu0 }
 0x124   :  { %v2229_v59 = vadd.f32 %v1704_v20, %v807_v56  ;;  %v1658_v60 = vadd.f32 %v1657_v57, %v1656_v46 }
 0x125   :  { %1199 = vperm.xlu0 %1761, %v1032_v4   ;;  %1273 = vperm.xlu1 %1762, %v1235_v12  }
 0x126   :  { %v810_v61 = vadd.f32 %v1658_v60, %v745_v58  ;;  %1723 = vmatprep.mubr.msk.f32.mxu1 %vm605_vm0, %v2229_v59 }
 0x128   :  { %v2233_v47 = vadd.f32 %v1705_v38, %v810_v61  ;;  %v1892_v38 = vmov 0.0  }
 0x129   :  { %1204 = vperm.xlu0 %1761, %v1033_v7   ;;  %1746 = vmatprep.subr.mxu1 %v1892_v38 }
 0x12a   :  { %1724 = vmatmul.mubr.msk.f32.gmra.mxu1 %vm605_vm0, %v2233_v47 }
 0x12b   :  { %1754 = vmatprep.mubr.msk.f32.mxu1 %vm1893_vm1, %v1892_v38  ;;  %1747 = vmatpush3.msra.mxu1 %v1340_v37  ;;  %v1302_v37 = vld [vmem:[%s2394_s5 + $0x10] sm:$0xff] }
 0x12c   :  { %1748 = vmatprep.subr.mxu1 %v1892_v38 }
 0x12d   :  { %1209 = vperm.xlu0 %1761, %v1034_v9   ;;  %1749 = vmatpush3.msra.mxu1 %v1339_v51 }
 0x12e   :  { %1750 = vmatprep.subr.mxu1 %v1892_v38 }
 0x131   :  { %1268 = vperm.xlu0 %1761, %v1234_v11  }
 0x135   :  { %1344 = vperm.xlu0 %1761, %v1341_v13  }
 0x182   :  { %v1185_v55 = vpop.permute.xlu1 %1184  ;;  %v1175_v42 = vpop.permute.xlu0 %1174 }
 0x188   :  { %v1190_v43 = vpop.permute.xlu1 %1189 }
 0x18c   :  { %v1244_v58 = vpop.permute.xlu1 %1243 }
 0x190   :  { %v1249_v63 = vpop.permute.xlu1 %1248 }
 0x194   :  { %v1180_v56 = vpop.permute.xlu0 %1179  ;;  %v1254_v8 = vpop.permute.xlu1 %1253 }
 0x198   :  { %v1239_v61 = vpop.permute.xlu0 %1238 }
 0x19c   :  { %v1195_v3 = vpop.permute.xlu0 %1194 }
 0x1d2   :  { %v1716_v15 = vpop.f32.mrf.mxu1 }
 0x1d3   :  { %v2286_v16 = vsub.f32 %v2205_v14, %v1716_v15 }
 0x1d4   :  { %v972_v17 = vpop.f32.mrf.mxu1 }
 0x1d5   :  { %v2289_v18 = vsub.f32 %v2201_v5, %v972_v17  ;;  %v1020_v20 = vmul.f32 %v2286_v16, %v2286_v16 }
 0x1d7   :  { %v1019_v19 = vmul.f32 %v2289_v18, %v2289_v18 }
 0x1d9   :  { %1734 = vmatprep.mubr.msk.f32.mxu0 %vm605_vm0, %v1019_v19 }
 0x1da   :  { %v1719_v21 = vpop.f32.mrf.mxu1  ;;  %1735 = vmatmul.mubr.msk.f32.vlgmr.msra.gmra.mxu0 %vm605_vm0, %v1020_v20 }
 0x1db   :  { %v2298_v23 = vsub.f32 %v2213_v31, %v1719_v21 }
 0x1dc   :  { %v982_v14 = vpop.f32.mrf.mxu1 }
 0x1dd   :  { %v2301_v24 = vsub.f32 %v2209_v22, %v982_v14  ;;  %v1022_v25 = vmul.f32 %v2298_v23, %v2298_v23 }
 0x1df   :  { %v1021_v5 = vmul.f32 %v2301_v24, %v2301_v24 }
 0x1e1   :  { %1737 = vmatprep.mubr.msk.f32.mxu0 %vm605_vm0, %v1021_v5  ;;  %v1259_v5 = vpop.permute.xlu1 %1258 }
 0x1e2   :  { %v1722_v26 = vpop.f32.mrf.mxu1  ;;  %1738 = vmatmul.mubr.msk.f32.gmra.mxu0 %vm605_vm0, %v1022_v25 }
 0x1e3   :  { %v2310_v27 = vsub.f32 %v2225_v44, %v1722_v26 }
 0x1e4   :  { %v992_v28 = vpop.f32.mrf.mxu1 }
 0x1e5   :  { %v2313_v29 = vsub.f32 %v2217_v52, %v992_v28  ;;  %v1024_v30 = vmul.f32 %v2310_v27, %v2310_v27  ;;  %v1338_v52 = vld [vmem:[%s2395_s6 + $0x8] sm:$0xff] }
 0x1e6   :  { %1751 = vmatpush3.msra.mxu1 %v1338_v52 }
 0x1e7   :  { %v1023_v22 = vmul.f32 %v2313_v29, %v2313_v29  ;;  %1752 = vmatprep.subr.mxu1 %v1892_v38 }
 0x1e8   :  { %1753 = vmatpush3.msra.mxu1 %v1337_v53 }
 0x1e9   :  { %1740 = vmatprep.mubr.msk.f32.mxu0 %vm605_vm0, %v1023_v22  ;;  %v1300_v22 = vld [vmem:[%s2394_s5] sm:$0xff] }
 0x1ea   :  { %v1725_v31 = vpop.f32.mrf.mxu1  ;;  %1741 = vmatmul.mubr.msk.f32.gmra.mxu0 %vm605_vm0, %v1024_v30 }
 0x1eb   :  { %v2322_v32 = vsub.f32 %v2233_v47, %v1725_v31 }
 0x1ec   :  { %v1002_v33 = vpop.f32.mrf.mxu1 }
 0x1ed   :  { %v2325_v34 = vsub.f32 %v2229_v59, %v1002_v33  ;;  %v1026_v36 = vmul.f32 %v2322_v32, %v2322_v32 }
 0x1ef   :  { %v1025_v35 = vmul.f32 %v2325_v34, %v2325_v34 }
 0x1f1   :  { %1743 = vmatprep.mubr.msk.f32.mxu0 %vm605_vm0, %v1025_v35  ;;  %v1301_v35 = vld [vmem:[%s2394_s5 + $0x8] sm:$0xff] }
 0x1f2   :  { %1744 = vmatmul.mubr.msk.f32.gmra.mxu0 %vm605_vm0, %v1026_v36 }
 0x29a   :  { %v1736_v54 = vpop.f32.mrf.mxu0 }
 0x29b   :  { %v1131_v39 = vadd.f32 1e-05, %v1736_v54  ;;  %v1264_v54 = vpop.permute.xlu1 %1263 }
 0x29c   :  { %v1125_v40 = vpop.f32.mrf.mxu0 }
 0x29d   :  { %1853 = vrsqrt.f32 %v1131_v39  ;;  %v1126_v41 = vadd.f32 1e-05, %v1125_v40 }
 0x29f   :  { %1855 = vrsqrt.f32 %v1126_v41 }
 0x2a2   :  { %v1739_v44 = vpop.f32.mrf.mxu0 }
 0x2a3   :  { %v1141_v45 = vadd.f32 1e-05, %v1739_v44 }
 0x2a4   :  { %v1135_v46 = vpop.f32.mrf.mxu0 }
 0x2a5   :  { %1857 = vrsqrt.f32 %v1141_v45  ;;  %v1136_v57 = vadd.f32 1e-05, %v1135_v46  ;;  %v1303_v46 = vld [vmem:[%s2394_s5 + $0x18] sm:$0xff] }
 0x2a7   :  { %1859 = vrsqrt.f32 %v1136_v57 }
 0x2aa   :  { %v1854_v59 = vpop.eup %1853  ;;  %v1742_v60 = vpop.f32.mrf.mxu0 }
 0x2ab   :  { %v1151_v47 = vadd.f32 1e-05, %v1742_v60  ;;  %v1213_v49 = vmul.f32 %v1854_v59, %v1180_v56 }
 0x2ac   :  { %v1856_v48 = vpop.eup %1855  ;;  %v1145_v50 = vpop.f32.mrf.mxu0 }
 0x2ad   :  { %v1212_v62 = vmul.f32 %v1856_v48, %v1175_v42  ;;  %1861 = vrsqrt.f32 %v1151_v47  ;;  %v1146_v0 = vadd.f32 1e-05, %v1145_v50  ;;  %v1221_v2 = vmul.f32 %v1213_v49, %v2286_v16 }
 0x2af   :  { %v1220_v1 = vmul.f32 %v1212_v62, %v2289_v18  ;;  %1863 = vrsqrt.f32 %v1146_v0  ;;  %v1277_v12 = vadd.f32 %v1244_v58, %v1221_v2  ;;  %v1200_v18 = vpop.permute.xlu0 %1199 }
 0x2b1   :  { %v1276_v6 = vadd.f32 %v1239_v61, %v1220_v1  ;;  %v1285_v16 = vmul.f32 0.2, %v1277_v12  ;;  %v1274_v1 = vpop.permute.xlu1 %1273 }
 0x2b2   :  { %v1858_v4 = vpop.eup %1857  ;;  %v1745_v7 = vpop.f32.mrf.mxu0 }
 0x2b3   :  { %v1215_v9 = vmul.f32 %v1858_v4, %v1190_v43  ;;  %v1161_v10 = vadd.f32 1e-05, %v1745_v7  ;;  %v1284_v17 = vmul.f32 0.2, %v1276_v6  ;;  %v1305_v7 = vld [vmem:[%s2394_s5 + $0x28] sm:$0xff] }
 0x2b4   :  { %v1860_v11 = vpop.eup %1859  ;;  %v1155_v13 = vpop.f32.mrf.mxu0 }
 0x2b5   :  { %v1214_v15 = vmul.f32 %v1860_v11, %v1185_v55  ;;  %v1223_v19 = vmul.f32 %v1215_v9, %v2298_v23  ;;  %1865 = vrsqrt.f32 %v1161_v10  ;;  %v1156_v20 = vadd.f32 1e-05, %v1155_v13 }
 0x2b6   :  { %v1292_v26 = vmax.f32 %v1276_v6, %v1284_v17  ;;  %v1293_v23 = vmax.f32 %v1277_v12, %v1285_v16 }
 0x2b7   :  { %v1222_v21 = vmul.f32 %v1214_v15, %v2301_v24  ;;  %1867 = vrsqrt.f32 %v1156_v20  ;;  %v1279_v28 = vadd.f32 %v1254_v8, %v1223_v19  ;;  %v1205_v24 = vpop.permute.xlu0 %1204  ;;  %v1306_v19 = vld [vmem:[%s2394_s5 + $0x30] sm:$0xff] }
 0x2b8   :  { %v1308_v52 = vmul.f32 %v1300_v22, %v1292_v26  ;;  %v1309_v39 = vmul.f32 %v1301_v35, %v1293_v23 }
 0x2b9   :  { %v1278_v14 = vadd.f32 %v1249_v63, %v1222_v21  ;;  %v1287_v53 = vmul.f32 0.2, %v1279_v28 }
 0x2ba   :  { %v1862_v25 = vpop.eup %1861  ;;  %v1316_v43 = vsel %vm605_vm0, %v1308_v52, 0.0  ;;  %v1317_v57 = vsel %vm605_vm0, %v1309_v39, 0.0 }
 0x2bb   :  { %v1286_v30 = vmul.f32 0.2, %v1278_v14  ;;  %v1217_v31 = vmul.f32 %v1862_v25, %v1200_v18  ;;  %v1295_v44 = vmax.f32 %v1279_v28, %v1287_v53  ;;  %v1210_v56 = vpop.permute.xlu0 %1209  ;;  %v1318_v47 = vadd.f32 %v1317_v57, %v1316_v43 }
 0x2bc   :  { %v1864_v33 = vpop.eup %1863 }
 0x2bd   :  { %v1294_v36 = vmax.f32 %v1278_v14, %v1286_v30  ;;  %v1225_v38 = vmul.f32 %v1217_v31, %v2310_v27  ;;  %v1216_v51 = vmul.f32 %v1864_v33, %v1195_v3  ;;  %v1311_v49 = vmul.f32 %v1303_v46, %v1295_v44 }
 0x2bf   :  { %v1224_v55 = vmul.f32 %v1216_v51, %v2313_v29  ;;  %v1310_v40 = vmul.f32 %v1302_v37, %v1294_v36  ;;  %v1281_v41 = vadd.f32 %v1264_v54, %v1225_v38  ;;  %v1304_v29 = vld [vmem:[%s2394_s5 + $0x20] sm:$0xff]  ;;  %v1269_v6 = vpop.permute.xlu0 %1268  ;;  %v1321_v8 = vsel %vm605_vm0, %v1311_v49, 0.0 }
 0x2c1   :  { %v1280_v42 = vadd.f32 %v1259_v5, %v1224_v55  ;;  %v1319_v58 = vsel %vm605_vm0, %v1310_v40, 0.0  ;;  %v1289_v59 = vmul.f32 0.2, %v1281_v41 }
 0x2c2   :  { %v1866_v45 = vpop.eup %1865  ;;  %v1320_v63 = vadd.f32 %v1319_v58, %v1318_v47 }
 0x2c3   :  { %v1288_v27 = vmul.f32 0.2, %v1280_v42  ;;  %v1219_v60 = vmul.f32 %v1866_v45, %v1210_v56  ;;  %v1297_v2 = vmax.f32 %v1281_v41, %v1289_v59  ;;  %v1345_v38 = vpop.permute.xlu0 %1344 }
 0x2c4   :  { %v1868_v61 = vpop.eup %1867 }
 0x2c5   :  { %v1296_v48 = vmax.f32 %v1280_v42, %v1288_v27  ;;  %v1227_v50 = vmul.f32 %v1219_v60, %v2322_v32  ;;  %v1218_v62 = vmul.f32 %v1868_v61, %v1205_v24  ;;  %v1322_v32 = vadd.f32 %v1321_v8, %v1320_v63 }
 0x2c6   :  { %v1313_v12 = vmul.f32 %v1305_v7, %v1297_v2  ;;  %v1347_v24 = vlaneseq }
 0x2c7   :  { %v1312_v0 = vmul.f32 %v1304_v29, %v1296_v48  ;;  %v1283_v3 = vadd.f32 %v1274_v1, %v1227_v50  ;;  %v1226_v4 = vmul.f32 %v1218_v62, %v2325_v34  ;;  %v1307_v34 = vld [vmem:[%s2394_s5 + $0x38] sm:$0xff]  ;;  %s1894_s5 = smov [#allocation3]  }
 0x2c8   :  { %v1325_v18 = vsel %vm605_vm0, %v1313_v12, 0.0  ;;  %v1348_v36 = vshrl.u32 %v1347_v24, 7  ;;  %s1432_s30 = sshll.u32 %s1894_s5, 4  ;;  %s1433_s30 = int_to_ptr.vmem [resolvable:$true] %s1432_s30 }
 0x2c9   :  { %v1323_v9 = vsel %vm605_vm0, %v1312_v0, 0.0  ;;  %v1291_v10 = vmul.f32 0.2, %v1283_v3  ;;  %v1282_v11 = vadd.f32 %v1269_v6, %v1226_v4  ;;  %s1869_s0 = scalar_lea.vmem %s1433_s30, 16  ;;  %s1873_s9 = scalar_lea.vmem %s1433_s30, 32 }
 0x2ca   :  { %v1324_v17 = vadd.f32 %v1323_v9, %v1322_v32  ;;  %v1349_v37 = vsub.s32 0, %v1348_v36  ;;  %p1870_p0 = scmp.ne.s32.totalorder %s1433_s30, %s1869_s0  ;;  %p1874_p1 = scmp.lt.s32.totalorder %s1433_s30, %s1433_s30 }
 0x2cb   :  { %v1299_v13 = vmax.f32 %v1283_v3, %v1291_v10  ;;  %v1290_v15 = vmul.f32 0.2, %v1282_v11  ;;  %p1875_p2 = scmp.lt.s32.totalorder %s1873_s9, %s1869_s0 }
 0x2cc   :  { %v1326_v14 = vadd.f32 %v1325_v18, %v1324_v17  ;;  %v1350_v51 = vrot.slane %v1345_v38, %v1349_v37 }
 0x2cd   :  { %v1298_v20 = vmax.f32 %v1282_v11, %v1290_v15  ;;  %v1315_v21 = vmul.f32 %v1307_v34, %v1299_v13  ;;  %p1876_p3 = por %p1875_p2, %p1874_p1 }
 0x2cf   :  { %v1314_v16 = vmul.f32 %v1306_v19, %v1298_v20  ;;  %v1329_v26 = vsel %vm605_vm0, %v1315_v21, 0.0  ;;  %p1877_p4 = pnand %p1876_p3, %p1870_p0 }
 0x2d1   :  { %v1327_v5 = vsel %vm605_vm0, %v1314_v16, 0.0 }
 0x2d2   :  { %v1328_v25 = vadd.f32 %v1327_v5, %v1326_v14 }
 0x2d4   :  { %v1330_v28 = vadd.f32 %v1329_v26, %v1328_v25 }
 0x2d6   :  { %v1331_v22 = vrot.slane %v1330_v28, 4 }
 0x2d8   :  { %v1332_v30 = vadd.f32 %v1331_v22, %v1330_v28 }
 0x2da   :  { %v1333_v31 = vrot.slane %v1332_v30, 2 }
 0x2dc   :  { %v1334_v33 = vadd.f32 %v1333_v31, %v1332_v30 }
 0x2de   :  { %v1335_v23 = vrot.slane %v1334_v33, 1 }
 0x2e0   :  { %v1336_v35 = vadd.f32 %v1335_v23, %v1334_v33 }
 0x2e2   :  { %1755 = vmatmul.mubr.msk.f32.vlgmr.msra.gmra.mxu1 %vm605_vm0, %v1336_v35 }
 0x3a2   :  { %v1420_v52 = vpop.f32.mrf.mxu1 }
 0x3a3   :  { %v1421_v53 = vadd.f32 %v1420_v52, %v1350_v51 }
 0x3a4   :  { %v1756_v54 = vpop.f32.mrf.mxu1 }
 0x3a5   :  { %1425 = vst.msk [vmem:[#allocation3] sm:$0x1] %vm1424_vm2, %v1421_v53 }
 0x3a6   :  { %1880 = shalt.err (!%p1877_p4)
}
 0x3a7   :  { %1435 = dma.vmem_to_hbm [thread:$0]  %s1433_s30, 16, %s2397_s8, [#allocation4]  }
 0x3a8   :  { %1889 = dma.done.wait [#allocation4], 16  }
 0x3a9   :  { %1890 = vsyncadd [#allocation4], 4294967280 }
 0x3aa   :  { %1439 = vsyncpa [#allocation4], 1 }

</bundles_post_ra>
